<compile_context>
chip_gen: v5e
topology: v5e:2x2
jax: 0.10.0
libtpu: 0.0.40
codegen_flags: <defaults>
</compile_context>

<pallas_src>
import functools

import jax
import jax.numpy as jnp
from jax.experimental import pallas as pl
from jax.experimental.pallas import tpu as pltpu

# After folding the affine prefix, the remaining stacked layers are:
#   enc1, enc2, enc3, dec1, dec2 (ReLU after each) and dec3 (Identity).
RELU_FLAGS = (True, True, True, True, True, False)
NUM_STACK_LAYERS = len(RELU_FLAGS)


def _round_up(n, m):
    return ((n + m - 1) // m) * m


def _pad2d(a, rows, cols):
    return jnp.zeros((rows, cols), a.dtype).at[: a.shape[0], : a.shape[1]].set(a)


def _pick_block_b(batch):
    """Adaptive batch tile: one step for small B, >= ~8 steps for large B."""
    bp = _round_up(batch, 8)
    if bp <= 4096:
        # Overhead/DMA-bound regime: a single grid step minimizes the ~0.35us
        # fixed cost per step on 1-TC chips (v5e/v6e).
        return bp
    # Large batch: give the pipeline >= ~8 steps to overlap x/out DMAs and let
    # the "parallel" axis shard across v7x's 2 TensorCores.  4096 rows x 128
    # lanes f32, double buffered for x+out, is ~8 MiB -> fits v7x's 64 MiB
    # physical / 32 MiB scoped VMEM comfortably.
    return min(4096, _round_up(pl.cdiv(bp, 8), 8))


# ---------------------------------------------------------------------------
# Kernel
# ---------------------------------------------------------------------------
def generator_kernel(x_ref, wpre_ref, w_ref, b_ref, out_ref):
    """x_ref: (block_b, Kp) f32; wpre_ref: (Kp, Dp); w_ref: (6, Dp, Dp);
    b_ref: (8, Dp) f32; out_ref: (block_b, Dp) f32."""
    cdt = wpre_ref.dtype  # compute/storage dtype of the weights (bf16 by default)

    # Folded affine prefix (resize_to_adj_size -> adj_A mixing -> resize_x_back).
    h = jnp.dot(x_ref[...].astype(cdt), wpre_ref[...],
                preferred_element_type=jnp.float32) + b_ref[pl.ds(0, 1), :]

    # Encoder + decoder: 6 dense layers, statically unrolled.
    for li, relu in enumerate(RELU_FLAGS):
        h = jnp.dot(h.astype(cdt), w_ref[li],
                    preferred_element_type=jnp.float32) + b_ref[pl.ds(li + 1, 1), :]
        if relu:
            h = jnp.maximum(h, 0.0)

    out_ref[...] = h.astype(out_ref.dtype)


# ---------------------------------------------------------------------------
# One-time parameter preparation (hoisted out of the forward path)
# ---------------------------------------------------------------------------
def prepare_generator_params(adj_A, params, *, param_dtype=jnp.bfloat16):
    """Fold the affine prefix, pad to 128 lanes, stack, and cast once."""
    (w_to, b_to, w_back, b_back,
     e1w, e1b, e2w, e2b, e3w, e3b,
     d1w, d1b, d2w, d2b, d3w, d3b) = params

    input_dim = w_to.shape[0]
    hidden_dim = e1w.shape[1]
    output_dim = adj_A.shape[0]

    # h = ((x @ w_to + b_to) @ adj_A.T) @ w_back + b_back
    #   =  x @ (w_to @ adj_A.T @ w_back) + (b_to @ adj_A.T @ w_back + b_back)
    adj_t = adj_A.T
    w_pre = (w_to @ adj_t) @ w_back                      # (input_dim, input_dim)
    b_pre = (b_to @ adj_t) @ w_back + b_back             # (1, input_dim)

    Dp = max(_round_up(input_dim, 128),
             _round_up(hidden_dim, 128),
             _round_up(output_dim, 128))
    Kp = _round_up(input_dim, 8)                         # narrow input lane width

    w_pre_p = _pad2d(w_pre, Kp, Dp).astype(param_dtype)  # (Kp, Dp)

    layer_ws = [e1w, e2w, e3w, d1w, d2w, d3w]
    layer_bs = [b_pre, e1b, e2b, e3b, d1b, d2b, d3b]
    w_stack = jnp.stack([_pad2d(w, Dp, Dp) for w in layer_ws]).astype(param_dtype)
    b_stack = jnp.zeros((8, Dp), jnp.float32)            # sublane-aligned bias slab
    for li, b in enumerate(layer_bs):
        b_stack = b_stack.at[li, : b.size].set(b.reshape(-1).astype(jnp.float32))

    dims = (input_dim, hidden_dim, output_dim, Kp, Dp)
    return (w_pre_p, w_stack, b_stack, dims)


# ---------------------------------------------------------------------------
# Forward wrapper
# ---------------------------------------------------------------------------
def generator_forward(x, prepared, *, block_b=None, slice_output=True):
    """x: (B, input_dim) f32 -> (B, output_dim) f32 (matches Generator.forward).

    With slice_output=False the lane/row padded (Bp, Dp) result is returned so
    downstream consumers can slice lazily (padded lanes are exactly zero)."""
    w_pre, w_stack, b_stack, dims = prepared
    input_dim, hidden_dim, output_dim, Kp, Dp = dims
    B = x.shape[0]

    if block_b is None:
        block_b = _pick_block_b(B)
    block_b = _round_up(min(block_b, _round_up(B, 8)), 8)
    Bp = _round_up(B, block_b)
    grid = (Bp // block_b,)

    # Only the batch rows (and input_dim -> Kp, a multiple of 8) are padded;
    # x is NOT padded to 128 lanes.
    x_pad = _pad2d(x.astype(jnp.float32), Bp, Kp)

    w_itemsize = jnp.dtype(w_stack.dtype).itemsize
    flops = 2 * Bp * (Kp * Dp + NUM_STACK_LAYERS * Dp * Dp)
    bytes_accessed = (Bp * Kp * 4 + Bp * Dp * 4
                      + (w_pre.size + w_stack.size) * w_itemsize
                      + b_stack.size * 4)
    cost = pl.CostEstimate(flops=flops, transcendentals=0,
                           bytes_accessed=bytes_accessed)

    out_pad = pl.pallas_call(
        generator_kernel,
        out_shape=jax.ShapeDtypeStruct((Bp, Dp), jnp.float32),
        grid=grid,
        in_specs=[
            pl.BlockSpec((block_b, Kp), lambda i: (i, 0)),                 # x tile (streamed)
            pl.BlockSpec((Kp, Dp), lambda i: (0, 0)),                      # folded prefix (resident)
            pl.BlockSpec((NUM_STACK_LAYERS, Dp, Dp), lambda i: (0, 0, 0)), # weight slab (resident)
            pl.BlockSpec((8, Dp), lambda i: (0, 0)),                       # bias slab (resident)
        ],
        out_specs=pl.BlockSpec((block_b, Dp), lambda i: (i, 0)),
        compiler_params=pltpu.CompilerParams(
            dimension_semantics=("parallel",)),
        cost_estimate=cost,
    )(x_pad, w_pre, w_stack, b_stack)

    if slice_output:
        return out_pad[:B, :output_dim]
    return out_pad


# ---------------------------------------------------------------------------
# Synthetic parameters / adjacency + references
# ---------------------------------------------------------------------------
def init_params(key, input_dim, hidden_dim, output_dim):
    """Deterministic synthetic parameter init (PyTorch Linear-style uniform)."""
    def linear(k, fan_in, fan_out):
        kw, kb = jax.random.split(k)
        bound = 1.0 / jnp.sqrt(fan_in)
        w = jax.random.uniform(kw, (fan_in, fan_out), jnp.float32, -bound, bound)
        b = jax.random.uniform(kb, (1, fan_out), jnp.float32, -bound, bound)
        return w, b

    keys = jax.random.split(key, 8)
    w_to, b_to = linear(keys[0], input_dim, output_dim)       # resize_to_adj_size
    w_back, b_back = linear(keys[1], output_dim, input_dim)   # resize_x_back
    e1w, e1b = linear(keys[2], input_dim, hidden_dim)
    e2w, e2b = linear(keys[3], hidden_dim, hidden_dim)
    e3w, e3b = linear(keys[4], hidden_dim, hidden_dim)
    d1w, d1b = linear(keys[5], hidden_dim, hidden_dim)
    d2w, d2b = linear(keys[6], hidden_dim, hidden_dim)
    d3w, d3b = linear(keys[7], hidden_dim, output_dim)
    return (w_to, b_to, w_back, b_back,
            e1w, e1b, e2w, e2b, e3w, e3b,
            d1w, d1b, d2w, d2b, d3w, d3b)


def make_adj_A(key, output_dim, p=0.25):
    """Deterministic stand-in for generate_adj_A: directed Erdos-Renyi(p),
    no self-loops, float32 0/1 adjacency."""
    # TODO(synk): original uses networkx + wall-clock timestamped CSV dump;
    # reproduced here as a seeded Bernoulli adjacency (no file I/O).
    a = jax.random.bernoulli(key, p, (output_dim, output_dim)).astype(jnp.float32)
    a = a * (1.0 - jnp.eye(output_dim, dtype=jnp.float32))
    return a


def reference_forward(x, adj_A, params):
    """Unfused f32 pure-JAX reference matching the original PyTorch forward."""
    (w_to, b_to, w_back, b_back,
     e1w, e1b, e2w, e2b, e3w, e3b,
     d1w, d1b, d2w, d2b, d3w, d3b) = params
    r = x @ w_to + b_to
    x2 = adj_A @ r.T
    h = x2.T @ w_back + b_back
    h = jnp.maximum(h @ e1w + e1b, 0.0)
    h = jnp.maximum(h @ e2w + e2b, 0.0)
    h = jnp.maximum(h @ e3w + e3b, 0.0)
    h = jnp.maximum(h @ d1w + d1b, 0.0)
    h = jnp.maximum(h @ d2w + d2b, 0.0)
    return h @ d3w + d3b


def reference_forward_prepared(x, prepared):
    """Pure-JAX reference with the SAME numerics as the kernel (folded prefix,
    bf16 weights, bf16 activation rounding before each dot, f32 accumulate)."""
    w_pre, w_stack, b_stack, dims = prepared
    input_dim, _, output_dim, Kp, _ = dims
    cdt = w_pre.dtype
    xk = jnp.zeros((x.shape[0], Kp), jnp.float32).at[:, :input_dim].set(x)
    h = jnp.dot(xk.astype(cdt), w_pre, preferred_element_type=jnp.float32) + b_stack[0]
    for li, relu in enumerate(RELU_FLAGS):
        h = jnp.dot(h.astype(cdt), w_stack[li],
                    preferred_element_type=jnp.float32) + b_stack[li + 1]
        if relu:
            h = jnp.maximum(h, 0.0)
    return h[:, :output_dim]


if __name__ == "__main__":
    B, input_dim, hidden_dim, output_dim = 256, 16, 32, 16

    key = jax.random.PRNGKey(0)
    k_x, k_adj, k_p = jax.random.split(key, 3)

    x = jax.random.normal(k_x, (B, input_dim), dtype=jnp.float32)
    adj_A = make_adj_A(k_adj, output_dim)
    params = init_params(k_p, input_dim, hidden_dim, output_dim)

    # One-time prep (fold, pad, stack, bf16 cast) -- OFF the forward path.
    prepared = prepare_generator_params(adj_A, params, param_dtype=jnp.bfloat16)

    fwd = jax.jit(functools.partial(generator_forward, prepared=prepared))
    out = jax.block_until_ready(fwd(x))
    assert out.shape == (B, output_dim)

    # Tight check against a pure-JAX reference with identical numerics.
    ref_matched = reference_forward_prepared(x, prepared)
    assert jnp.allclose(out, ref_matched, atol=2e-3, rtol=2e-3)

    # Looser check against the original unfused f32 PyTorch-semantics forward
    # (bf16 weights/activations introduce ~1% drift over 7 layers).
    ref_f32 = reference_forward(x, adj_A, params)
    assert jnp.allclose(out, ref_f32, atol=5e-2, rtol=5e-2)

    print("KERNEL_OK")
</pallas_src>

<mosaic_0001>
module attributes {stable_mosaic.version = 11 : i64} {
  func.func @generator_kernel(%arg0: i32, %arg1: memref<256x16xf32, #tpu.memory_space<vmem>>, %arg2: memref<16x128xbf16, #tpu.memory_space<vmem>>, %arg3: memref<6x128x128xbf16, #tpu.memory_space<vmem>>, %arg4: memref<8x128xf32, #tpu.memory_space<vmem>>, %arg5: memref<256x128xf32, #tpu.memory_space<vmem>>) attributes {dimension_semantics = [#tpu.dimension_semantics<parallel>], iteration_bounds = array<i64: 1>, scalar_prefetch = 0 : i64, scratch_operands = 0 : i64, tpu.core_type = #tpu.core_type<tc>, window_params = [{transform_indices = @transform_0, window_bounds = array<i64: 256, 16>}, {pipeline_mode = #tpu.pipeline_mode<synchronous>, transform_indices = @transform_1, window_bounds = array<i64: 16, 128>}, {pipeline_mode = #tpu.pipeline_mode<synchronous>, transform_indices = @transform_2, window_bounds = array<i64: 6, 128, 128>}, {pipeline_mode = #tpu.pipeline_mode<synchronous>, transform_indices = @transform_3, window_bounds = array<i64: 8, 128>}, {transform_indices = @transform_4, window_bounds = array<i64: 256, 128>}]} {
    %c0 = arith.constant 0 : index
    %c0_0 = arith.constant 0 : index
    %0 = vector.load %arg1[%c0, %c0_0] : memref<256x16xf32, #tpu.memory_space<vmem>>, vector<256x16xf32>
    %1 = arith.truncf %0 : vector<256x16xf32> to vector<256x16xbf16>
    %c0_1 = arith.constant 0 : index
    %c0_2 = arith.constant 0 : index
    %2 = vector.load %arg2[%c0_1, %c0_2] : memref<16x128xbf16, #tpu.memory_space<vmem>>, vector<16x128xbf16>
    %cst = arith.constant dense<0.000000e+00> : vector<256x128xf32>
    %3 = tpu.matmul %1, %2, %cst {dimension_numbers = #tpu.dot_dimension_numbers<[1], [0], [0], [1], [0, 0, 1, 1], [], []>} : vector<256x16xbf16>, vector<16x128xbf16>, vector<256x128xf32> -> vector<256x128xf32>
    %c0_3 = arith.constant 0 : index
    %c0_4 = arith.constant 0 : index
    %4 = vector.load %arg4[%c0_3, %c0_4] : memref<8x128xf32, #tpu.memory_space<vmem>>, vector<1x128xf32>
    %5 = vector.broadcast %4 : vector<1x128xf32> to vector<256x128xf32>
    %6 = arith.addf %3, %5 : vector<256x128xf32>
    %7 = arith.truncf %6 : vector<256x128xf32> to vector<256x128xbf16>
    %c0_5 = arith.constant 0 : index
    %c0_6 = arith.constant 0 : index
    %c0_7 = arith.constant 0 : index
    %8 = vector.load %arg3[%c0_5, %c0_6, %c0_7] : memref<6x128x128xbf16, #tpu.memory_space<vmem>>, vector<1x128x128xbf16>
    %9 = vector.shape_cast %8 : vector<1x128x128xbf16> to vector<128x128xbf16>
    %cst_8 = arith.constant dense<0.000000e+00> : vector<256x128xf32>
    %10 = tpu.matmul %7, %9, %cst_8 {dimension_numbers = #tpu.dot_dimension_numbers<[1], [0], [0], [1], [0, 0, 1, 1], [], []>} : vector<256x128xbf16>, vector<128x128xbf16>, vector<256x128xf32> -> vector<256x128xf32>
    %c1 = arith.constant 1 : index
    %c0_9 = arith.constant 0 : index
    %11 = vector.load %arg4[%c1, %c0_9] : memref<8x128xf32, #tpu.memory_space<vmem>>, vector<1x128xf32>
    %12 = vector.broadcast %11 : vector<1x128xf32> to vector<256x128xf32>
    %13 = arith.addf %10, %12 : vector<256x128xf32>
    %cst_10 = arith.constant 0.000000e+00 : f32
    %14 = vector.broadcast %cst_10 : f32 to vector<256x128xf32>
    %15 = arith.maximumf %13, %14 : vector<256x128xf32>
    %16 = arith.truncf %15 : vector<256x128xf32> to vector<256x128xbf16>
    %c1_11 = arith.constant 1 : index
    %c0_12 = arith.constant 0 : index
    %c0_13 = arith.constant 0 : index
    %17 = vector.load %arg3[%c1_11, %c0_12, %c0_13] : memref<6x128x128xbf16, #tpu.memory_space<vmem>>, vector<1x128x128xbf16>
    %18 = vector.shape_cast %17 : vector<1x128x128xbf16> to vector<128x128xbf16>
    %cst_14 = arith.constant dense<0.000000e+00> : vector<256x128xf32>
    %19 = tpu.matmul %16, %18, %cst_14 {dimension_numbers = #tpu.dot_dimension_numbers<[1], [0], [0], [1], [0, 0, 1, 1], [], []>} : vector<256x128xbf16>, vector<128x128xbf16>, vector<256x128xf32> -> vector<256x128xf32>
    %c2 = arith.constant 2 : index
    %c0_15 = arith.constant 0 : index
    %20 = vector.load %arg4[%c2, %c0_15] : memref<8x128xf32, #tpu.memory_space<vmem>>, vector<1x128xf32>
    %21 = vector.broadcast %20 : vector<1x128xf32> to vector<256x128xf32>
    %22 = arith.addf %19, %21 : vector<256x128xf32>
    %cst_16 = arith.constant 0.000000e+00 : f32
    %23 = vector.broadcast %cst_16 : f32 to vector<256x128xf32>
    %24 = arith.maximumf %22, %23 : vector<256x128xf32>
    %25 = arith.truncf %24 : vector<256x128xf32> to vector<256x128xbf16>
    %c2_17 = arith.constant 2 : index
    %c0_18 = arith.constant 0 : index
    %c0_19 = arith.constant 0 : index
    %26 = vector.load %arg3[%c2_17, %c0_18, %c0_19] : memref<6x128x128xbf16, #tpu.memory_space<vmem>>, vector<1x128x128xbf16>
    %27 = vector.shape_cast %26 : vector<1x128x128xbf16> to vector<128x128xbf16>
    %cst_20 = arith.constant dense<0.000000e+00> : vector<256x128xf32>
    %28 = tpu.matmul %25, %27, %cst_20 {dimension_numbers = #tpu.dot_dimension_numbers<[1], [0], [0], [1], [0, 0, 1, 1], [], []>} : vector<256x128xbf16>, vector<128x128xbf16>, vector<256x128xf32> -> vector<256x128xf32>
    %c3 = arith.constant 3 : index
    %c0_21 = arith.constant 0 : index
    %29 = vector.load %arg4[%c3, %c0_21] : memref<8x128xf32, #tpu.memory_space<vmem>>, vector<1x128xf32>
    %30 = vector.broadcast %29 : vector<1x128xf32> to vector<256x128xf32>
    %31 = arith.addf %28, %30 : vector<256x128xf32>
    %cst_22 = arith.constant 0.000000e+00 : f32
    %32 = vector.broadcast %cst_22 : f32 to vector<256x128xf32>
    %33 = arith.maximumf %31, %32 : vector<256x128xf32>
    %34 = arith.truncf %33 : vector<256x128xf32> to vector<256x128xbf16>
    %c3_23 = arith.constant 3 : index
    %c0_24 = arith.constant 0 : index
    %c0_25 = arith.constant 0 : index
    %35 = vector.load %arg3[%c3_23, %c0_24, %c0_25] : memref<6x128x128xbf16, #tpu.memory_space<vmem>>, vector<1x128x128xbf16>
    %36 = vector.shape_cast %35 : vector<1x128x128xbf16> to vector<128x128xbf16>
    %cst_26 = arith.constant dense<0.000000e+00> : vector<256x128xf32>
    %37 = tpu.matmul %34, %36, %cst_26 {dimension_numbers = #tpu.dot_dimension_numbers<[1], [0], [0], [1], [0, 0, 1, 1], [], []>} : vector<256x128xbf16>, vector<128x128xbf16>, vector<256x128xf32> -> vector<256x128xf32>
    %c4 = arith.constant 4 : index
    %c0_27 = arith.constant 0 : index
    %38 = vector.load %arg4[%c4, %c0_27] : memref<8x128xf32, #tpu.memory_space<vmem>>, vector<1x128xf32>
    %39 = vector.broadcast %38 : vector<1x128xf32> to vector<256x128xf32>
    %40 = arith.addf %37, %39 : vector<256x128xf32>
    %cst_28 = arith.constant 0.000000e+00 : f32
    %41 = vector.broadcast %cst_28 : f32 to vector<256x128xf32>
    %42 = arith.maximumf %40, %41 : vector<256x128xf32>
    %43 = arith.truncf %42 : vector<256x128xf32> to vector<256x128xbf16>
    %c4_29 = arith.constant 4 : index
    %c0_30 = arith.constant 0 : index
    %c0_31 = arith.constant 0 : index
    %44 = vector.load %arg3[%c4_29, %c0_30, %c0_31] : memref<6x128x128xbf16, #tpu.memory_space<vmem>>, vector<1x128x128xbf16>
    %45 = vector.shape_cast %44 : vector<1x128x128xbf16> to vector<128x128xbf16>
    %cst_32 = arith.constant dense<0.000000e+00> : vector<256x128xf32>
    %46 = tpu.matmul %43, %45, %cst_32 {dimension_numbers = #tpu.dot_dimension_numbers<[1], [0], [0], [1], [0, 0, 1, 1], [], []>} : vector<256x128xbf16>, vector<128x128xbf16>, vector<256x128xf32> -> vector<256x128xf32>
    %c5 = arith.constant 5 : index
    %c0_33 = arith.constant 0 : index
    %47 = vector.load %arg4[%c5, %c0_33] : memref<8x128xf32, #tpu.memory_space<vmem>>, vector<1x128xf32>
    %48 = vector.broadcast %47 : vector<1x128xf32> to vector<256x128xf32>
    %49 = arith.addf %46, %48 : vector<256x128xf32>
    %cst_34 = arith.constant 0.000000e+00 : f32
    %50 = vector.broadcast %cst_34 : f32 to vector<256x128xf32>
    %51 = arith.maximumf %49, %50 : vector<256x128xf32>
    %52 = arith.truncf %51 : vector<256x128xf32> to vector<256x128xbf16>
    %c5_35 = arith.constant 5 : index
    %c0_36 = arith.constant 0 : index
    %c0_37 = arith.constant 0 : index
    %53 = vector.load %arg3[%c5_35, %c0_36, %c0_37] : memref<6x128x128xbf16, #tpu.memory_space<vmem>>, vector<1x128x128xbf16>
    %54 = vector.shape_cast %53 : vector<1x128x128xbf16> to vector<128x128xbf16>
    %cst_38 = arith.constant dense<0.000000e+00> : vector<256x128xf32>
    %55 = tpu.matmul %52, %54, %cst_38 {dimension_numbers = #tpu.dot_dimension_numbers<[1], [0], [0], [1], [0, 0, 1, 1], [], []>} : vector<256x128xbf16>, vector<128x128xbf16>, vector<256x128xf32> -> vector<256x128xf32>
    %c6 = arith.constant 6 : index
    %c0_39 = arith.constant 0 : index
    %56 = vector.load %arg4[%c6, %c0_39] : memref<8x128xf32, #tpu.memory_space<vmem>>, vector<1x128xf32>
    %57 = vector.broadcast %56 : vector<1x128xf32> to vector<256x128xf32>
    %58 = arith.addf %55, %57 : vector<256x128xf32>
    %c0_40 = arith.constant 0 : index
    %c0_41 = arith.constant 0 : index
    %59 = vector.load %arg5[%c0_40, %c0_41] : memref<256x128xf32, #tpu.memory_space<vmem>>, vector<256x128xf32>
    tpu.vector_store %arg5[%c0_40, %c0_41], %58 {strides = array<i32>} : memref<256x128xf32, #tpu.memory_space<vmem>>, vector<256x128xf32>,
    return
  }
  func.func @transform_0(%arg0: i32) -> (i32, i32) {
    %c0_i32 = arith.constant 0 : i32
    %c0_i32_0 = arith.constant 0 : i32
    return %arg0, %c0_i32 : i32, i32
  }
  func.func @transform_1(%arg0: i32) -> (i32, i32) {
    %c0_i32 = arith.constant 0 : i32
    %c0_i32_0 = arith.constant 0 : i32
    %c0_i32_1 = arith.constant 0 : i32
    return %c0_i32, %c0_i32_0 : i32, i32
  }
  func.func @transform_2(%arg0: i32) -> (i32, i32, i32) {
    %c0_i32 = arith.constant 0 : i32
    %c0_i32_0 = arith.constant 0 : i32
    %c0_i32_1 = arith.constant 0 : i32
    %c0_i32_2 = arith.constant 0 : i32
    return %c0_i32, %c0_i32_0, %c0_i32_1 : i32, i32, i32
  }
  func.func @transform_3(%arg0: i32) -> (i32, i32) {
    %c0_i32 = arith.constant 0 : i32
    %c0_i32_0 = arith.constant 0 : i32
    %c0_i32_1 = arith.constant 0 : i32
    return %c0_i32, %c0_i32_0 : i32, i32
  }
  func.func @transform_4(%arg0: i32) -> (i32, i32) {
    %c0_i32 = arith.constant 0 : i32
    %c0_i32_0 = arith.constant 0 : i32
    return %arg0, %c0_i32 : i32, i32
  }
}

</mosaic_0001>

<bundles_post_ra>
// kernel: generator_forward.1
= control target key start
LH: loop header
LB: loop body
LE: loop exit
PB: predicated region body
PF: predicated region fallthrough
CT: control target
= control target key end

     0   :  { %9 = vsyncpa [#allocation3], 0  ;;  %s1772_s18 = smov [#allocation2]   ;;  %s1773_s20 = smov 64   ;;  %s2285_s0 = inlined_call_operand.vmem [shape: f32[256,16], index: 0, kind: input, shape index: {}]   ;;  %s2286_s1 = inlined_call_operand.vmem [shape: bf16[16,128], index: 1, kind: input, shape index: {}]   ;;  %s2287_s2 = inlined_call_operand.hbm [shape: bf16[6,128,128], index: 2, kind: input, shape index: {}]   ;;  %s2288_s3 = inlined_call_operand.vmem [shape: f32[8,128], index: 3, kind: input, shape index: {}]   ;;  %s2289_s4 = inlined_call_operand.vmem [shape: f32[256,128], index: 4, kind: output, shape index: {}]  }
   0x1   :  { %s18_s17 = sshll.u32 %s2287_s2, 4  ;;  %s20_s19 = sshll.u32 %s1772_s18, 4  ;;  %s19_s17 = int_to_ptr.hbm [resolvable:$true] %s18_s17  ;;  %s21_s19 = int_to_ptr.vmem [resolvable:$true] %s20_s19 }
   0x2   :  { %s1774_s21 = smov 4  }
   0x3   :  { %26 = dma.hbm_to_vmem [thread:$0]  %s19_s17, 6144, %s21_s19, [#allocation3], %s1773_s20, %s1773_s20, %s1774_s21  }
   0x4   :  { %1770 = dma.done.wait [#allocation3], 6144  }
   0x5   :  { %1771 = vsyncadd [#allocation3], 4294961152  ;;  %v1670_v0 = vld [vmem:[%s2286_s1] sm:$0xff]  ;;  %v35_v2 = vld [vmem:[%s2285_s0 + $0x8] sm:$0xff]  ;;  %vm92_vm0 = vcmask 130048  }
   0x6   :  { %v34_v1 = vld [vmem:[%s2285_s0] sm:$0xff]  ;;  %148 = vmatpush.bf16.msra.mxu0 %v1670_v0  ;;  %1719 = vmatpush.bf16.msra.mxu3 %v1670_v0  ;;  %v36_v4 = vld [vmem:[%s2285_s0 + $0x10] sm:$0xff]  ;;  %v37_v5 = vld [vmem:[%s2285_s0 + $0x18] sm:$0xff] }
   0x7   :  { %v66_v3 = vpack.c.bf16 %v35_v2, %v34_v1  ;;  %v67_v6 = vpack.c.bf16 %v37_v5, %v36_v4  ;;  %v38_v7 = vld [vmem:[%s2285_s0 + $0x20] sm:$0xff]  ;;  %v39_v8 = vld [vmem:[%s2285_s0 + $0x28] sm:$0xff]  ;;  %v40_v10 = vld [vmem:[%s2285_s0 + $0x30] sm:$0xff] }
   0x8   :  { %v68_v9 = vpack.c.bf16 %v39_v8, %v38_v7  ;;  %v41_v11 = vld [vmem:[%s2285_s0 + $0x38] sm:$0xff]  ;;  %v42_v13 = vld [vmem:[%s2285_s0 + $0x40] sm:$0xff]  ;;  %v43_v14 = vld [vmem:[%s2285_s0 + $0x48] sm:$0xff] }
   0x9   :  { %1462 = vmatmul.msk.bf16.vlgmr.msra.gmra.mxu0 %vm92_vm0, %v66_v3  ;;  %v69_v12 = vpack.c.bf16 %v41_v11, %v40_v10  ;;  %v70_v15 = vpack.c.bf16 %v43_v14, %v42_v13  ;;  %v1678_v16 = vld [vmem:[#allocation2 + $0x38] sm:$0xff]  ;;  %v1677_v17 = vld [vmem:[#allocation2 + $0x30] sm:$0xff]  ;;  %v1676_v21 = vld [vmem:[#allocation2 + $0x28] sm:$0xff] }
   0xa   :  { %312 = vmatpush.bf16.msra.mxu1 %v1678_v16  ;;  %1720 = vmatpush.bf16.msrb.mxu3 %v1678_v16  ;;  %v44_v18 = vld [vmem:[%s2285_s0 + $0x50] sm:$0xff]  ;;  %v45_v19 = vld [vmem:[%s2285_s0 + $0x58] sm:$0xff]  ;;  %v1675_v22 = vld [vmem:[#allocation2 + $0x20] sm:$0xff] }
   0xb   :  { %v71_v20 = vpack.c.bf16 %v45_v19, %v44_v18  ;;  %v1674_v23 = vld [vmem:[#allocation2 + $0x18] sm:$0xff]  ;;  %v46_v24 = vld [vmem:[%s2285_s0 + $0x60] sm:$0xff]  ;;  %v47_v25 = vld [vmem:[%s2285_s0 + $0x68] sm:$0xff] }
   0xc   :  { %v72_v26 = vpack.c.bf16 %v47_v25, %v46_v24  ;;  %v1673_v27 = vld [vmem:[#allocation2 + $0x10] sm:$0xff]  ;;  %v1672_v28 = vld [vmem:[#allocation2 + $0x8] sm:$0xff]  ;;  %v1671_v29 = vld [vmem:[#allocation2] sm:$0xff] }
   0xd   :  { %v48_v30 = vld [vmem:[%s2285_s0 + $0x70] sm:$0xff]  ;;  %v49_v31 = vld [vmem:[%s2285_s0 + $0x78] sm:$0xff]  ;;  %v50_v33 = vld [vmem:[%s2285_s0 + $0x80] sm:$0xff] }
   0xe   :  { %313 = vmatpush.bf16.msra.mxu1 %v1677_v17  ;;  %1721 = vmatpush.bf16.msrb.mxu3 %v1677_v17  ;;  %v73_v32 = vpack.c.bf16 %v49_v31, %v48_v30  ;;  %v51_v34 = vld [vmem:[%s2285_s0 + $0x88] sm:$0xff]  ;;  %v1872_v37 = vld [vmem:[%s2288_s3] ss:$0 sm:$0xff]  ;;  %v52_v42 = vld [vmem:[%s2285_s0 + $0x90] sm:$0xff] }
   0xf   :  { %v74_v35 = vpack.c.bf16 %v51_v34, %v50_v33  ;;  %v53_v43 = vld [vmem:[%s2285_s0 + $0x98] sm:$0xff]  ;;  %v54_v50 = vld [vmem:[%s2285_s0 + $0xa0] sm:$0xff]  ;;  %v55_v51 = vld [vmem:[%s2285_s0 + $0xa8] sm:$0xff] }
  0x10   :  { %v75_v44 = vpack.c.bf16 %v53_v43, %v52_v42  ;;  %v76_v52 = vpack.c.bf16 %v55_v51, %v54_v50  ;;  %v60_v54 = vld [vmem:[%s2285_s0 + $0xd0] sm:$0xff]  ;;  %v61_v55 = vld [vmem:[%s2285_s0 + $0xd8] sm:$0xff]  ;;  %v62_v1 = vld [vmem:[%s2285_s0 + $0xe0] sm:$0xff] }
  0x11   :  { %v79_v56 = vpack.c.bf16 %v61_v55, %v60_v54  ;;  %v56_v61 = vld [vmem:[%s2285_s0 + $0xb0] sm:$0xff]  ;;  %v57_v62 = vld [vmem:[%s2285_s0 + $0xb8] sm:$0xff]  ;;  %v63_v2 = vld [vmem:[%s2285_s0 + $0xe8] sm:$0xff] }
  0x12   :  { %314 = vmatpush.bf16.msra.mxu1 %v1676_v21  ;;  %1722 = vmatpush.bf16.msrb.mxu3 %v1676_v21  ;;  %v77_v63 = vpack.c.bf16 %v57_v62, %v56_v61  ;;  %v80_v3 = vpack.c.bf16 %v63_v2, %v62_v1  ;;  %v58_v8 = vld [vmem:[%s2285_s0 + $0xc0] sm:$0xff]  ;;  %v65_v13 = vld [vmem:[%s2285_s0 + $0xf8] sm:$0xff]  ;;  %v1685_v25 = vld [vmem:[#allocation2 + $0x70] sm:$0xff] }
  0x13   :  { %1475 = vmatmul.msk.bf16.vlgmr.msra.gmra.mxu3 %vm92_vm0, %v79_v56  ;;  %v1686_v21 = vld [vmem:[#allocation2 + $0x78] sm:$0xff]  ;;  %v1681_v34 = vld [vmem:[#allocation2 + $0x50] sm:$0xff] }
  0x14   :  { %516 = vmatpush.bf16.msra.mxu2 %v1686_v21  ;;  %v1682_v30 = vld [vmem:[#allocation2 + $0x58] sm:$0xff] }
  0x16   :  { %315 = vmatpush.bf16.msra.mxu1 %v1675_v22  ;;  %1723 = vmatpush.bf16.msrb.mxu3 %v1675_v22 }
  0x18   :  { %517 = vmatpush.bf16.msra.mxu2 %v1685_v25 }
  0x19   :  { %1463 = vmatmul.msk.bf16.gmra.mxu0 %vm92_vm0, %v67_v6 }
  0x1a   :  { %316 = vmatpush.bf16.msra.mxu1 %v1674_v23  ;;  %1724 = vmatpush.bf16.msrb.mxu3 %v1674_v23 }
  0x1e   :  { %317 = vmatpush.bf16.msra.mxu1 %v1673_v27  ;;  %1725 = vmatpush.bf16.msrb.mxu3 %v1673_v27  ;;  %v1684_v27 = vld [vmem:[#allocation2 + $0x68] sm:$0xff] }
  0x1f   :  { %518 = vmatpush.bf16.msra.mxu2 %v1684_v27 }
  0x22   :  { %318 = vmatpush.bf16.msra.mxu1 %v1672_v28  ;;  %1726 = vmatpush.bf16.msrb.mxu3 %v1672_v28  ;;  %v1683_v28 = vld [vmem:[#allocation2 + $0x60] sm:$0xff] }
  0x23   :  { %1476 = vmatmul.msk.bf16.gmra.mxu3 %vm92_vm0, %v80_v3  ;;  %519 = vmatpush.bf16.msra.mxu2 %v1683_v28 }
  0x26   :  { %319 = vmatpush.bf16.msra.mxu1 %v1671_v29  ;;  %1727 = vmatpush.bf16.msrb.mxu3 %v1671_v29 }
  0x27   :  { %520 = vmatpush.bf16.msra.mxu2 %v1682_v30 }
  0x29   :  { %1464 = vmatmul.msk.bf16.gmra.mxu0 %vm92_vm0, %v68_v9  ;;  %v59_v9 = vld [vmem:[%s2285_s0 + $0xc8] sm:$0xff] }
  0x2a   :  { %v78_v10 = vpack.c.bf16 %v59_v9, %v58_v8  ;;  %1728 = vmatpush.bf16.msra.mxu3 %v1686_v21 }
  0x2b   :  { %521 = vmatpush.bf16.msra.mxu2 %v1681_v34 }
  0x2e   :  { %1729 = vmatpush.bf16.msra.mxu3 %v1685_v25 }
  0x32   :  { %1730 = vmatpush.bf16.msra.mxu3 %v1684_v27 }
  0x36   :  { %1731 = vmatpush.bf16.msra.mxu3 %v1683_v28 }
  0x39   :  { %1465 = vmatmul.msk.bf16.gmra.mxu0 %vm92_vm0, %v69_v12  ;;  %v64_v12 = vld [vmem:[%s2285_s0 + $0xf0] sm:$0xff] }
  0x3a   :  { %v81_v14 = vpack.c.bf16 %v65_v13, %v64_v12  ;;  %1732 = vmatpush.bf16.msra.mxu3 %v1682_v30 }
  0x3c   :  { %1477 = vmatmul.msk.bf16.gmra.mxu3 %vm92_vm0, %v81_v14 }
  0x3e   :  { %1733 = vmatpush.bf16.msra.mxu3 %v1681_v34 }
  0x49   :  { %1466 = vmatmul.msk.bf16.gmra.mxu0 %vm92_vm0, %v70_v15 }
  0x59   :  { %1467 = vmatmul.msk.bf16.gmra.mxu0 %vm92_vm0, %v71_v20 }
  0x69   :  { %1468 = vmatmul.msk.bf16.gmra.mxu0 %vm92_vm0, %v72_v26 }
  0x79   :  { %1469 = vmatmul.msk.bf16.gmra.mxu0 %vm92_vm0, %v73_v32 }
  0x86   :  { %v150_v36 = vpop.f32.mrf.mxu0 }
  0x87   :  { %v151_v39 = vadd.f32 %v1872_v37, %v150_v36  ;;  %v1680_v36 = vld [vmem:[#allocation2 + $0x48] sm:$0xff] }
  0x88   :  { %522 = vmatpush.bf16.msra.mxu2 %v1680_v36  ;;  %1734 = vmatpush.bf16.msra.mxu3 %v1680_v36 }
  0x89   :  { %1470 = vmatmul.msk.bf16.gmra.mxu0 %vm92_vm0, %v74_v35 }
  0x8e   :  { %v152_v38 = vpop.f32.mrf.mxu0 }
  0x8f   :  { %v153_v40 = vadd.f32 %v1872_v37, %v152_v38  ;;  %v1679_v38 = vld [vmem:[#allocation2 + $0x40] sm:$0xff] }
  0x90   :  { %523 = vmatpush.bf16.msra.mxu2 %v1679_v38  ;;  %1735 = vmatpush.bf16.msra.mxu3 %v1679_v38 }
  0x91   :  { %v230_v41 = vpack.c.bf16 %v153_v40, %v151_v39 }
  0x93   :  { %320 = vmatmul.bf16.vlgmr.msra.gmra.mxu1 %v230_v41 }
  0x96   :  { %v155_v45 = vpop.f32.mrf.mxu0  ;;  %v215_v25 = vpop.f32.mrf.mxu3 }
  0x97   :  { %v156_v47 = vadd.f32 %v1872_v37, %v155_v45 }
  0x99   :  { %1471 = vmatmul.msk.bf16.gmra.mxu0 %vm92_vm0, %v75_v44 }
  0x9e   :  { %v157_v46 = vpop.f32.mrf.mxu0 }
  0x9f   :  { %v158_v48 = vadd.f32 %v1872_v37, %v157_v46 }
  0xa1   :  { %v231_v49 = vpack.c.bf16 %v158_v48, %v156_v47 }
  0xa3   :  { %325 = vmatmul.bf16.gmra.mxu1 %v231_v49  ;;  %v1944_v49 = vld [vmem:[%s2288_s3 + $0x1] ss:$0 sm:$0xff] }
  0xa6   :  { %v160_v53 = vpop.f32.mrf.mxu0 }
  0xa7   :  { %v161_v58 = vadd.f32 %v1872_v37, %v160_v53 }
  0xa9   :  { %1472 = vmatmul.msk.bf16.gmra.mxu0 %vm92_vm0, %v76_v52 }
  0xae   :  { %v162_v57 = vpop.f32.mrf.mxu0 }
  0xaf   :  { %v163_v59 = vadd.f32 %v1872_v37, %v162_v57 }
  0xb1   :  { %v232_v60 = vpack.c.bf16 %v163_v59, %v161_v58 }
  0xb3   :  { %330 = vmatmul.bf16.gmra.mxu1 %v232_v60 }
  0xb6   :  { %v165_v0 = vpop.f32.mrf.mxu0 }
  0xb7   :  { %v166_v5 = vadd.f32 %v1872_v37, %v165_v0 }
  0xb9   :  { %1473 = vmatmul.msk.bf16.gmra.mxu0 %vm92_vm0, %v77_v63 }
  0xbe   :  { %v167_v4 = vpop.f32.mrf.mxu0 }
  0xbf   :  { %v168_v6 = vadd.f32 %v1872_v37, %v167_v4 }
  0xc1   :  { %v233_v7 = vpack.c.bf16 %v168_v6, %v166_v5 }
  0xc3   :  { %335 = vmatmul.bf16.gmra.mxu1 %v233_v7 }
  0xc6   :  { %v170_v11 = vpop.f32.mrf.mxu0 }
  0xc7   :  { %v171_v16 = vadd.f32 %v1872_v37, %v170_v11 }
  0xc9   :  { %1474 = vmatmul.msk.bf16.gmra.mxu0 %vm92_vm0, %v78_v10 }
  0xce   :  { %v172_v15 = vpop.f32.mrf.mxu0 }
  0xcf   :  { %v173_v17 = vadd.f32 %v1872_v37, %v172_v15 }
  0xd1   :  { %v234_v18 = vpack.c.bf16 %v173_v17, %v171_v16 }
  0xd3   :  { %340 = vmatmul.bf16.gmra.mxu1 %v234_v18 }
  0xd6   :  { %v175_v19 = vpop.f32.mrf.mxu0 }
  0xd7   :  { %v176_v22 = vadd.f32 %v1872_v37, %v175_v19 }
  0xde   :  { %v177_v20 = vpop.f32.mrf.mxu0 }
  0xdf   :  { %v178_v23 = vadd.f32 %v1872_v37, %v177_v20 }
  0xe1   :  { %v235_v24 = vpack.c.bf16 %v178_v23, %v176_v22 }
  0xe3   :  { %345 = vmatmul.bf16.gmra.mxu1 %v235_v24 }
  0xe6   :  { %v180_v26 = vpop.f32.mrf.mxu0 }
  0xe7   :  { %v181_v31 = vadd.f32 %v1872_v37, %v180_v26 }
  0xee   :  { %v182_v29 = vpop.f32.mrf.mxu0 }
  0xef   :  { %v183_v32 = vadd.f32 %v1872_v37, %v182_v29 }
  0xf1   :  { %v236_v33 = vpack.c.bf16 %v183_v32, %v181_v31 }
  0xf3   :  { %350 = vmatmul.bf16.gmra.mxu1 %v236_v33 }
  0xf6   :  { %v185_v35 = vpop.f32.mrf.mxu0 }
  0xf7   :  { %v186_v40 = vadd.f32 %v1872_v37, %v185_v35  ;;  %v217_v35 = vpop.f32.mrf.mxu3 }
  0xfe   :  { %v187_v39 = vpop.f32.mrf.mxu0 }
  0xff   :  { %v188_v41 = vadd.f32 %v1872_v37, %v187_v39 }
 0x101   :  { %v237_v42 = vpack.c.bf16 %v188_v41, %v186_v40 }
 0x103   :  { %355 = vmatmul.bf16.gmra.mxu1 %v237_v42  ;;  %v220_v42 = vpop.f32.mrf.mxu3 }
 0x106   :  { %v190_v43 = vpop.f32.mrf.mxu0 }
 0x107   :  { %v191_v45 = vadd.f32 %v1872_v37, %v190_v43  ;;  %v216_v43 = vadd.f32 %v1872_v37, %v215_v25 }
 0x10e   :  { %v192_v44 = vpop.f32.mrf.mxu0 }
 0x10f   :  { %v193_v46 = vadd.f32 %v1872_v37, %v192_v44  ;;  %v218_v44 = vadd.f32 %v1872_v37, %v217_v35  ;;  %v1694_v35 = vld [vmem:[#allocation2 + $0xb8] sm:$0xff] }
 0x110   :  { %v321_v47 = vpop.f32.mrf.mxu1 }
 0x111   :  { %v238_v48 = vpack.c.bf16 %v193_v46, %v191_v45  ;;  %v322_v51 = vadd.f32 %v1944_v49, %v321_v47  ;;  %v243_v47 = vpack.c.bf16 %v218_v44, %v216_v43  ;;  %v1693_v44 = vld [vmem:[#allocation2 + $0xb0] sm:$0xff] }
 0x113   :  { %360 = vmatmul.bf16.gmra.mxu1 %v238_v48  ;;  %v401_v54 = vmax.f32 %v322_v51, 0.0  ;;  %v222_v48 = vpop.f32.mrf.mxu3 }
 0x116   :  { %v195_v50 = vpop.f32.mrf.mxu0 }
 0x117   :  { %v196_v58 = vadd.f32 %v1872_v37, %v195_v50 }
 0x118   :  { %v323_v52 = vpop.f32.mrf.mxu1 }
 0x119   :  { %v324_v53 = vadd.f32 %v1944_v49, %v323_v52 }
 0x11b   :  { %v402_v55 = vmax.f32 %v324_v53, 0.0 }
 0x11d   :  { %v433_v56 = vpack.c.bf16 %v402_v55, %v401_v54  ;;  %v221_v55 = vadd.f32 %v1872_v37, %v220_v42 }
 0x11e   :  { %v197_v57 = vpop.f32.mrf.mxu0 }
 0x11f   :  { %v198_v59 = vadd.f32 %v1872_v37, %v197_v57  ;;  %524 = vmatmul.bf16.vlgmr.msra.gmra.mxu2 %v433_v56  ;;  %v223_v56 = vadd.f32 %v1872_v37, %v222_v48  ;;  %v1691_v48 = vld [vmem:[#allocation2 + $0xa0] sm:$0xff] }
 0x120   :  { %v326_v60 = vpop.f32.mrf.mxu1 }
 0x121   :  { %v239_v61 = vpack.c.bf16 %v198_v59, %v196_v58  ;;  %v327_v63 = vadd.f32 %v1944_v49, %v326_v60  ;;  %v225_v58 = vpop.f32.mrf.mxu3  ;;  %v244_v60 = vpack.c.bf16 %v223_v56, %v221_v55 }
 0x123   :  { %365 = vmatmul.bf16.gmra.mxu1 %v239_v61  ;;  %v403_v2 = vmax.f32 %v327_v63, 0.0 }
 0x126   :  { %v200_v62 = vpop.f32.mrf.mxu0 }
 0x127   :  { %v201_v6 = vadd.f32 %v1872_v37, %v200_v62 }
 0x128   :  { %v328_v0 = vpop.f32.mrf.mxu1 }
 0x129   :  { %v329_v1 = vadd.f32 %v1944_v49, %v328_v0  ;;  %v227_v0 = vpop.f32.mrf.mxu3 }
 0x12b   :  { %v404_v3 = vmax.f32 %v329_v1, 0.0 }
 0x12d   :  { %v434_v4 = vpack.c.bf16 %v404_v3, %v403_v2  ;;  %v226_v3 = vadd.f32 %v1872_v37, %v225_v58 }
 0x12e   :  { %v202_v5 = vpop.f32.mrf.mxu0 }
 0x12f   :  { %v203_v7 = vadd.f32 %v1872_v37, %v202_v5  ;;  %529 = vmatmul.bf16.gmra.mxu2 %v434_v4  ;;  %v228_v4 = vadd.f32 %v1872_v37, %v227_v0 }
 0x130   :  { %v331_v8 = vpop.f32.mrf.mxu1 }
 0x131   :  { %v240_v9 = vpack.c.bf16 %v203_v7, %v201_v6  ;;  %v332_v11 = vadd.f32 %v1944_v49, %v331_v8  ;;  %v245_v7 = vpack.c.bf16 %v228_v4, %v226_v3  ;;  %v1688_v3 = vld [vmem:[#allocation2 + $0x88] sm:$0xff] }
 0x133   :  { %370 = vmatmul.bf16.gmra.mxu1 %v240_v9  ;;  %v405_v14 = vmax.f32 %v332_v11, 0.0 }
 0x136   :  { %v205_v10 = vpop.f32.mrf.mxu0 }
 0x137   :  { %v206_v18 = vadd.f32 %v1872_v37, %v205_v10 }
 0x138   :  { %v333_v12 = vpop.f32.mrf.mxu1 }
 0x139   :  { %v334_v13 = vadd.f32 %v1944_v49, %v333_v12 }
 0x13b   :  { %v406_v15 = vmax.f32 %v334_v13, 0.0 }
 0x13d   :  { %v435_v16 = vpack.c.bf16 %v406_v15, %v405_v14 }
 0x13e   :  { %v207_v17 = vpop.f32.mrf.mxu0 }
 0x13f   :  { %v208_v19 = vadd.f32 %v1872_v37, %v207_v17  ;;  %534 = vmatmul.bf16.gmra.mxu2 %v435_v16 }
 0x140   :  { %v336_v20 = vpop.f32.mrf.mxu1 }
 0x141   :  { %v241_v21 = vpack.c.bf16 %v208_v19, %v206_v18  ;;  %v337_v23 = vadd.f32 %v1944_v49, %v336_v20 }
 0x143   :  { %375 = vmatmul.bf16.gmra.mxu1 %v241_v21  ;;  %v407_v27 = vmax.f32 %v337_v23, 0.0 }
 0x146   :  { %v210_v22 = vpop.f32.mrf.mxu0 }
 0x147   :  { %v211_v31 = vadd.f32 %v1872_v37, %v210_v22 }
 0x148   :  { %v338_v24 = vpop.f32.mrf.mxu1 }
 0x149   :  { %v339_v26 = vadd.f32 %v1944_v49, %v338_v24 }
 0x14b   :  { %v408_v28 = vmax.f32 %v339_v26, 0.0 }
 0x14d   :  { %v436_v29 = vpack.c.bf16 %v408_v28, %v407_v27 }
 0x14e   :  { %v212_v30 = vpop.f32.mrf.mxu0 }
 0x14f   :  { %v213_v32 = vadd.f32 %v1872_v37, %v212_v30  ;;  %539 = vmatmul.bf16.gmra.mxu2 %v436_v29 }
 0x150   :  { %v341_v33 = vpop.f32.mrf.mxu1 }
 0x151   :  { %v242_v34 = vpack.c.bf16 %v213_v32, %v211_v31  ;;  %v342_v36 = vadd.f32 %v1944_v49, %v341_v33 }
 0x153   :  { %380 = vmatmul.bf16.vlgmr.msrb.gmra.mxu3 %v242_v34  ;;  %v409_v40 = vmax.f32 %v342_v36, 0.0 }
 0x154   :  { %720 = vmatpush.bf16.msrb.mxu3 %v1694_v35 }
 0x158   :  { %v343_v38 = vpop.f32.mrf.mxu1  ;;  %721 = vmatpush.bf16.msrb.mxu3 %v1693_v44 }
 0x159   :  { %v344_v39 = vadd.f32 %v1944_v49, %v343_v38 }
 0x15b   :  { %v410_v41 = vmax.f32 %v344_v39, 0.0 }
 0x15d   :  { %v437_v45 = vpack.c.bf16 %v410_v41, %v409_v40  ;;  %v1702_v40 = vld [vmem:[#allocation2 + $0xf8] sm:$0xff] }
 0x15e   :  { %924 = vmatpush.bf16.msrb.mxu0 %v1702_v40 }
 0x15f   :  { %544 = vmatmul.bf16.gmra.mxu2 %v437_v45  ;;  %v1692_v45 = vld [vmem:[#allocation2 + $0xa8] sm:$0xff] }
 0x160   :  { %v346_v46 = vpop.f32.mrf.mxu1  ;;  %722 = vmatpush.bf16.msrb.mxu3 %v1692_v45 }
 0x161   :  { %v347_v50 = vadd.f32 %v1944_v49, %v346_v46 }
 0x163   :  { %385 = vmatmul.bf16.gmra.mxu3 %v243_v47  ;;  %v411_v53 = vmax.f32 %v347_v50, 0.0 }
 0x164   :  { %723 = vmatpush.bf16.msrb.mxu3 %v1691_v48 }
 0x168   :  { %v348_v51 = vpop.f32.mrf.mxu1 }
 0x169   :  { %v349_v52 = vadd.f32 %v1944_v49, %v348_v51 }
 0x16b   :  { %v412_v54 = vmax.f32 %v349_v52, 0.0 }
 0x16d   :  { %v438_v57 = vpack.c.bf16 %v412_v54, %v411_v53  ;;  %v1701_v54 = vld [vmem:[#allocation2 + $0xf0] sm:$0xff] }
 0x16e   :  { %925 = vmatpush.bf16.msrb.mxu0 %v1701_v54 }
 0x16f   :  { %549 = vmatmul.bf16.gmra.mxu2 %v438_v57  ;;  %v1690_v57 = vld [vmem:[#allocation2 + $0x98] sm:$0xff] }
 0x170   :  { %v351_v59 = vpop.f32.mrf.mxu1  ;;  %724 = vmatpush.bf16.msrb.mxu3 %v1690_v57 }
 0x171   :  { %v352_v61 = vadd.f32 %v1944_v49, %v351_v59 }
 0x173   :  { %390 = vmatmul.bf16.gmra.mxu3 %v244_v60  ;;  %v413_v1 = vmax.f32 %v352_v61, 0.0  ;;  %v1689_v61 = vld [vmem:[#allocation2 + $0x90] sm:$0xff] }
 0x174   :  { %725 = vmatpush.bf16.msrb.mxu3 %v1689_v61  ;;  %v1710_v61 = vld [vmem:[#allocation2 + $0x138] sm:$0xff] }
 0x175   :  { %1128 = vmatpush.bf16.msrb.mxu1 %v1710_v61  ;;  %v1707_v61 = vld [vmem:[#allocation2 + $0x120] sm:$0xff] }
 0x178   :  { %v353_v62 = vpop.f32.mrf.mxu1  ;;  %726 = vmatpush.bf16.msrb.mxu3 %v1688_v3 }
 0x179   :  { %v354_v63 = vadd.f32 %v1944_v49, %v353_v62 }
 0x17b   :  { %v414_v2 = vmax.f32 %v354_v63, 0.0 }
 0x17d   :  { %v439_v5 = vpack.c.bf16 %v414_v2, %v413_v1 }
 0x17f   :  { %554 = vmatmul.bf16.gmra.mxu2 %v439_v5 }
 0x180   :  { %v356_v6 = vpop.f32.mrf.mxu1 }
 0x181   :  { %v357_v8 = vadd.f32 %v1944_v49, %v356_v6 }
 0x183   :  { %395 = vmatmul.bf16.gmra.mxu3 %v245_v7  ;;  %v415_v11 = vmax.f32 %v357_v8, 0.0  ;;  %v1700_v7 = vld [vmem:[#allocation2 + $0xe8] sm:$0xff]  ;;  %v1687_v8 = vld [vmem:[#allocation2 + $0x80] sm:$0xff] }
 0x184   :  { %926 = vmatpush.bf16.msrb.mxu0 %v1700_v7  ;;  %727 = vmatpush.bf16.msrb.mxu3 %v1687_v8 }
 0x188   :  { %v358_v9 = vpop.f32.mrf.mxu1 }
 0x189   :  { %v359_v10 = vadd.f32 %v1944_v49, %v358_v9 }
 0x18b   :  { %v416_v12 = vmax.f32 %v359_v10, 0.0 }
 0x18d   :  { %v440_v13 = vpack.c.bf16 %v416_v12, %v415_v11 }
 0x18f   :  { %559 = vmatmul.bf16.gmra.mxu2 %v440_v13 }
 0x190   :  { %v361_v14 = vpop.f32.mrf.mxu1 }
 0x191   :  { %v362_v15 = vadd.f32 %v1944_v49, %v361_v14 }
 0x193   :  { %v417_v17 = vmax.f32 %v362_v15, 0.0 }
 0x198   :  { %v363_v16 = vpop.f32.mrf.mxu1 }
 0x199   :  { %v364_v37 = vadd.f32 %v1944_v49, %v363_v16 }
 0x19b   :  { %v418_v18 = vmax.f32 %v364_v37, 0.0 }
 0x19d   :  { %v441_v19 = vpack.c.bf16 %v418_v18, %v417_v17 }
 0x19f   :  { %564 = vmatmul.bf16.gmra.mxu2 %v441_v19 }
 0x1a0   :  { %v366_v20 = vpop.f32.mrf.mxu1 }
 0x1a1   :  { %v367_v21 = vadd.f32 %v1944_v49, %v366_v20 }
 0x1a2   :  { %v525_v55 = vpop.f32.mrf.mxu2 }
 0x1a3   :  { %v419_v24 = vmax.f32 %v367_v21, 0.0 }
 0x1a8   :  { %v368_v22 = vpop.f32.mrf.mxu1 }
 0x1a9   :  { %v369_v23 = vadd.f32 %v1944_v49, %v368_v22 }
 0x1aa   :  { %v527_v59 = vpop.f32.mrf.mxu2 }
 0x1ab   :  { %v420_v25 = vmax.f32 %v369_v23, 0.0  ;;  %v1699_v23 = vld [vmem:[#allocation2 + $0xe0] sm:$0xff] }
 0x1ac   :  { %927 = vmatpush.bf16.msrb.mxu0 %v1699_v23 }
 0x1ad   :  { %v442_v26 = vpack.c.bf16 %v420_v25, %v419_v24  ;;  %v1995_v24 = vld [vmem:[%s2288_s3 + $0x2] ss:$0 sm:$0xff] }
 0x1ae   :  { %v528_v25 = vadd.f32 %v1995_v24, %v527_v59 }
 0x1af   :  { %569 = vmatmul.bf16.gmra.mxu2 %v442_v26  ;;  %v526_v26 = vadd.f32 %v1995_v24, %v525_v55 }
 0x1b0   :  { %v371_v27 = vpop.f32.mrf.mxu1 }
 0x1b1   :  { %v372_v28 = vadd.f32 %v1944_v49, %v371_v27 }
 0x1b2   :  { %v530_v4 = vpop.f32.mrf.mxu2 }
 0x1b3   :  { %v421_v31 = vmax.f32 %v372_v28, 0.0  ;;  %v606_v28 = vmax.f32 %v528_v25, 0.0 }
 0x1b8   :  { %v373_v29 = vpop.f32.mrf.mxu1 }
 0x1b9   :  { %v374_v30 = vadd.f32 %v1944_v49, %v373_v29  ;;  %v605_v29 = vmax.f32 %v526_v26, 0.0 }
 0x1ba   :  { %v532_v11 = vpop.f32.mrf.mxu2 }
 0x1bb   :  { %v422_v32 = vmax.f32 %v374_v30, 0.0 }
 0x1bd   :  { %v443_v33 = vpack.c.bf16 %v422_v32, %v421_v31  ;;  %v533_v31 = vadd.f32 %v1995_v24, %v532_v11  ;;  %v531_v32 = vadd.f32 %v1995_v24, %v530_v4 }
 0x1bf   :  { %574 = vmatmul.bf16.gmra.mxu2 %v443_v33  ;;  %v1698_v33 = vld [vmem:[#allocation2 + $0xd8] sm:$0xff]  ;;  %v607_v35 = vmax.f32 %v531_v32, 0.0 }
 0x1c0   :  { %v376_v34 = vpop.f32.mrf.mxu1  ;;  %928 = vmatpush.bf16.msrb.mxu0 %v1698_v33 }
 0x1c1   :  { %v377_v36 = vadd.f32 %v1944_v49, %v376_v34  ;;  %v608_v34 = vmax.f32 %v533_v31, 0.0 }
 0x1c2   :  { %v535_v16 = vpop.f32.mrf.mxu2 }
 0x1c3   :  { %v423_v41 = vmax.f32 %v377_v36, 0.0 }
 0x1c8   :  { %v378_v38 = vpop.f32.mrf.mxu1 }
 0x1c9   :  { %v379_v39 = vadd.f32 %v1944_v49, %v378_v38  ;;  %v638_v38 = vpack.c.bf16 %v608_v34, %v607_v35 }
 0x1ca   :  { %v537_v22 = vpop.f32.mrf.mxu2 }
 0x1cb   :  { %v424_v42 = vmax.f32 %v379_v39, 0.0  ;;  %v538_v39 = vadd.f32 %v1995_v24, %v537_v22 }
 0x1cd   :  { %v444_v43 = vpack.c.bf16 %v424_v42, %v423_v41  ;;  %v536_v41 = vadd.f32 %v1995_v24, %v535_v16  ;;  %v610_v42 = vmax.f32 %v538_v39, 0.0  ;;  %v1695_v16 = vld [vmem:[#allocation2 + $0xc0] sm:$0xff] }
 0x1cf   :  { %579 = vmatmul.bf16.gmra.mxu2 %v444_v43  ;;  %v609_v43 = vmax.f32 %v536_v41, 0.0 }
 0x1d1   :  { %v639_v44 = vpack.c.bf16 %v610_v42, %v609_v43 }
 0x1d2   :  { %v540_v27 = vpop.f32.mrf.mxu2 }
 0x1d3   :  { %v541_v48 = vadd.f32 %v1995_v24, %v540_v27 }
 0x1d6   :  { %v381_v46 = vpop.f32.mrf.mxu3 }
 0x1d7   :  { %v382_v47 = vadd.f32 %v1944_v49, %v381_v46 }
 0x1d9   :  { %v425_v52 = vmax.f32 %v382_v47, 0.0  ;;  %v1697_v47 = vld [vmem:[#allocation2 + $0xd0] sm:$0xff] }
 0x1da   :  { %v542_v30 = vpop.f32.mrf.mxu2  ;;  %929 = vmatpush.bf16.msrb.mxu0 %v1697_v47 }
 0x1db   :  { %v543_v46 = vadd.f32 %v1995_v24, %v542_v30 }
 0x1de   :  { %v383_v50 = vpop.f32.mrf.mxu3 }
 0x1df   :  { %v384_v51 = vadd.f32 %v1944_v49, %v383_v50  ;;  %v612_v50 = vmax.f32 %v543_v46, 0.0 }
 0x1e1   :  { %v426_v53 = vmax.f32 %v384_v51, 0.0 }
 0x1e2   :  { %v545_v36 = vpop.f32.mrf.mxu2 }
 0x1e3   :  { %v445_v56 = vpack.c.bf16 %v426_v53, %v425_v52  ;;  %v611_v52 = vmax.f32 %v541_v48, 0.0 }
 0x1e5   :  { %584 = vmatmul.bf16.vlgmr.msra.gmra.mxu3 %v445_v56  ;;  %v640_v53 = vpack.c.bf16 %v612_v50, %v611_v52  ;;  %v546_v56 = vadd.f32 %v1995_v24, %v545_v36 }
 0x1e6   :  { %v386_v58 = vpop.f32.mrf.mxu3 }
 0x1e7   :  { %v387_v60 = vadd.f32 %v1944_v49, %v386_v58  ;;  %v613_v58 = vmax.f32 %v546_v56, 0.0 }
 0x1e9   :  { %v427_v0 = vmax.f32 %v387_v60, 0.0  ;;  %v1696_v60 = vld [vmem:[#allocation2 + $0xc8] sm:$0xff] }
 0x1ea   :  { %v547_v40 = vpop.f32.mrf.mxu2  ;;  %930 = vmatpush.bf16.msrb.mxu0 %v1696_v60  ;;  %v2035_v60 = vld [vmem:[%s2288_s3 + $0x3] ss:$0 sm:$0xff] }
 0x1eb   :  { %v548_v55 = vadd.f32 %v1995_v24, %v547_v40  ;;  %v1708_v40 = vld [vmem:[#allocation2 + $0x128] sm:$0xff] }
 0x1ed   :  { %v614_v57 = vmax.f32 %v548_v55, 0.0 }
 0x1ee   :  { %v388_v62 = vpop.f32.mrf.mxu3  ;;  %931 = vmatpush.bf16.msrb.mxu0 %v1695_v16 }
 0x1ef   :  { %v389_v63 = vadd.f32 %v1944_v49, %v388_v62  ;;  %v641_v59 = vpack.c.bf16 %v614_v57, %v613_v58 }
 0x1f1   :  { %v428_v1 = vmax.f32 %v389_v63, 0.0 }
 0x1f2   :  { %v550_v45 = vpop.f32.mrf.mxu2 }
 0x1f3   :  { %v446_v2 = vpack.c.bf16 %v428_v1, %v427_v0  ;;  %v551_v1 = vadd.f32 %v1995_v24, %v550_v45 }
 0x1f5   :  { %589 = vmatmul.bf16.gmra.mxu3 %v446_v2 }
 0x1f6   :  { %v391_v5 = vpop.f32.mrf.mxu3 }
 0x1f7   :  { %v392_v6 = vadd.f32 %v1944_v49, %v391_v5 }
 0x1f9   :  { %v429_v12 = vmax.f32 %v392_v6, 0.0  ;;  %v615_v6 = vmax.f32 %v551_v1, 0.0 }
 0x1fa   :  { %v552_v51 = vpop.f32.mrf.mxu2 }
 0x1fb   :  { %v553_v0 = vadd.f32 %v1995_v24, %v552_v51 }
 0x1fd   :  { %v616_v3 = vmax.f32 %v553_v0, 0.0 }
 0x1fe   :  { %v393_v9 = vpop.f32.mrf.mxu3 }
 0x1ff   :  { %v394_v10 = vadd.f32 %v1944_v49, %v393_v9 }
 0x201   :  { %v430_v13 = vmax.f32 %v394_v10, 0.0  ;;  %v642_v10 = vpack.c.bf16 %v616_v3, %v615_v6 }
 0x202   :  { %v555_v54 = vpop.f32.mrf.mxu2 }
 0x203   :  { %v447_v14 = vpack.c.bf16 %v430_v13, %v429_v12 }
 0x205   :  { %594 = vmatmul.bf16.gmra.mxu3 %v447_v14 }
 0x206   :  { %v396_v15 = vpop.f32.mrf.mxu3 }
 0x207   :  { %v397_v37 = vadd.f32 %v1944_v49, %v396_v15  ;;  %v1709_v15 = vld [vmem:[#allocation2 + $0x130] sm:$0xff] }
 0x208   :  { %1129 = vmatpush.bf16.msrb.mxu1 %v1709_v15 }
 0x209   :  { %v431_v19 = vmax.f32 %v397_v37, 0.0  ;;  %v556_v37 = vadd.f32 %v1995_v24, %v555_v54 }
 0x20a   :  { %v557_v62 = vpop.f32.mrf.mxu2 }
 0x20b   :  { %v558_v14 = vadd.f32 %v1995_v24, %v557_v62 }
 0x20c   :  { %1130 = vmatpush.bf16.msrb.mxu1 %v1708_v40 }
 0x20e   :  { %v398_v17 = vpop.f32.mrf.mxu3 }
 0x20f   :  { %v399_v18 = vadd.f32 %v1944_v49, %v398_v17  ;;  %v637_v49 = vpack.c.bf16 %v606_v28, %v605_v29  ;;  %v618_v17 = vmax.f32 %v558_v14, 0.0 }
 0x210   :  { %1131 = vmatpush.bf16.msrb.mxu1 %v1707_v61 }
 0x211   :  { %v432_v20 = vmax.f32 %v399_v18, 0.0 }
 0x212   :  { %v560_v2 = vpop.f32.mrf.mxu2 }
 0x213   :  { %v448_v21 = vpack.c.bf16 %v432_v20, %v431_v19  ;;  %v617_v20 = vmax.f32 %v556_v37, 0.0  ;;  %v561_v30 = vadd.f32 %v1995_v24, %v560_v2 }
 0x215   :  { %599 = vmatmul.bf16.gmra.mxu3 %v448_v21  ;;  %v643_v26 = vpack.c.bf16 %v618_v17, %v617_v20  ;;  %v619_v34 = vmax.f32 %v561_v30, 0.0 }
 0x21a   :  { %v562_v12 = vpop.f32.mrf.mxu2 }
 0x21b   :  { %v563_v29 = vadd.f32 %v1995_v24, %v562_v12 }
 0x21d   :  { %v620_v31 = vmax.f32 %v563_v29, 0.0 }
 0x21f   :  { %v644_v39 = vpack.c.bf16 %v620_v31, %v619_v34 }
 0x222   :  { %v565_v22 = vpop.f32.mrf.mxu2 }
 0x223   :  { %v566_v45 = vadd.f32 %v1995_v24, %v565_v22 }
 0x225   :  { %728 = vmatmul.bf16.vlgmr.msrb.gmra.mxu3 %v637_v49  ;;  %v621_v51 = vmax.f32 %v566_v45, 0.0 }
 0x22a   :  { %v567_v49 = vpop.f32.mrf.mxu2 }
 0x232   :  { %v570_v42 = vpop.f32.mrf.mxu2 }
 0x233   :  { %v571_v62 = vadd.f32 %v1995_v24, %v570_v42 }
 0x235   :  { %733 = vmatmul.bf16.gmra.mxu3 %v638_v38  ;;  %v623_v2 = vmax.f32 %v571_v62, 0.0 }
 0x23a   :  { %v572_v48 = vpop.f32.mrf.mxu2 }
 0x242   :  { %v575_v58 = vpop.f32.mrf.mxu2 }
 0x243   :  { %v576_v12 = vadd.f32 %v1995_v24, %v575_v58 }
 0x245   :  { %738 = vmatmul.bf16.gmra.mxu3 %v639_v44  ;;  %v568_v44 = vadd.f32 %v1995_v24, %v567_v49  ;;  %v625_v37 = vmax.f32 %v576_v12, 0.0  ;;  %v1716_v12 = vld [vmem:[#allocation2 + $0x168] sm:$0xff] }
 0x247   :  { %v622_v46 = vmax.f32 %v568_v44, 0.0 }
 0x249   :  { %v645_v55 = vpack.c.bf16 %v622_v46, %v621_v51 }
 0x255   :  { %743 = vmatmul.bf16.gmra.mxu3 %v640_v53 }
 0x265   :  { %748 = vmatmul.bf16.gmra.mxu3 %v641_v59  ;;  %v573_v59 = vadd.f32 %v1995_v24, %v572_v48 }
 0x268   :  { %v585_v63 = vpop.f32.mrf.mxu3 }
 0x269   :  { %v586_v4 = vadd.f32 %v1995_v24, %v585_v63  ;;  %v624_v63 = vmax.f32 %v573_v59, 0.0 }
 0x26b   :  { %v629_v8 = vmax.f32 %v586_v4, 0.0  ;;  %v646_v6 = vpack.c.bf16 %v624_v63, %v623_v2  ;;  %v1703_v2 = vld [vmem:[#allocation2 + $0x100] sm:$0xff] }
 0x270   :  { %v587_v5 = vpop.f32.mrf.mxu3 }
 0x271   :  { %v588_v7 = vadd.f32 %v1995_v24, %v587_v5 }
 0x273   :  { %v630_v9 = vmax.f32 %v588_v7, 0.0  ;;  %v577_v7 = vpop.f32.mrf.mxu2 }
 0x275   :  { %753 = vmatmul.bf16.gmra.mxu3 %v642_v10  ;;  %v2011_v11 = vpack.c.bf16 %v630_v9, %v629_v8  ;;  %v578_v10 = vadd.f32 %v1995_v24, %v577_v7 }
 0x277   :  { %v626_v14 = vmax.f32 %v578_v10, 0.0 }
 0x278   :  { %v590_v13 = vpop.f32.mrf.mxu3 }
 0x279   :  { %v591_v18 = vadd.f32 %v1995_v24, %v590_v13  ;;  %v647_v20 = vpack.c.bf16 %v626_v14, %v625_v37 }
 0x27b   :  { %v631_v23 = vmax.f32 %v591_v18, 0.0  ;;  %v580_v13 = vpop.f32.mrf.mxu2 }
 0x280   :  { %v592_v19 = vpop.f32.mrf.mxu3 }
 0x281   :  { %v593_v21 = vadd.f32 %v1995_v24, %v592_v19 }
 0x283   :  { %v632_v25 = vmax.f32 %v593_v21, 0.0  ;;  %v1706_v21 = vld [vmem:[#allocation2 + $0x118] sm:$0xff] }
 0x284   :  { %1132 = vmatpush.bf16.msrb.mxu1 %v1706_v21 }
 0x285   :  { %758 = vmatmul.bf16.gmra.mxu3 %v643_v26  ;;  %v2017_v27 = vpack.c.bf16 %v632_v25, %v631_v23  ;;  %v582_v23 = vpop.f32.mrf.mxu2 }
 0x286   :  { %v583_v26 = vadd.f32 %v1995_v24, %v582_v23  ;;  %v1715_v23 = vld [vmem:[#allocation2 + $0x160] sm:$0xff] }
 0x288   :  { %v595_v28 = vpop.f32.mrf.mxu3  ;;  %v628_v29 = vmax.f32 %v583_v26, 0.0 }
 0x289   :  { %v596_v32 = vadd.f32 %v1995_v24, %v595_v28  ;;  %v581_v28 = vadd.f32 %v1995_v24, %v580_v13 }
 0x28b   :  { %v633_v36 = vmax.f32 %v596_v32, 0.0  ;;  %v627_v31 = vmax.f32 %v581_v28, 0.0 }
 0x290   :  { %v597_v33 = vpop.f32.mrf.mxu3 }
 0x291   :  { %v598_v35 = vadd.f32 %v1995_v24, %v597_v33 }
 0x293   :  { %v634_v38 = vmax.f32 %v598_v35, 0.0  ;;  %v648_v35 = vpack.c.bf16 %v628_v29, %v627_v31 }
 0x295   :  { %763 = vmatmul.bf16.gmra.mxu3 %v644_v39  ;;  %v2023_v41 = vpack.c.bf16 %v634_v38, %v633_v36  ;;  %v1705_v39 = vld [vmem:[#allocation2 + $0x110] sm:$0xff] }
 0x296   :  { %1133 = vmatpush.bf16.msrb.mxu1 %v1705_v39 }
 0x298   :  { %v600_v43 = vpop.f32.mrf.mxu3 }
 0x299   :  { %v601_v47 = vadd.f32 %v1995_v24, %v600_v43 }
 0x29b   :  { %v635_v53 = vmax.f32 %v601_v47, 0.0  ;;  %v1718_v47 = vld [vmem:[#allocation2 + $0x178] sm:$0xff] }
 0x29c   :  { %1332 = vmatpush.bf16.msrb.mxu2 %v1718_v47  ;;  %v1714_v47 = vld [vmem:[#allocation2 + $0x158] sm:$0xff] }
 0x2a0   :  { %v602_v50 = vpop.f32.mrf.mxu3 }
 0x2a1   :  { %v603_v52 = vadd.f32 %v1995_v24, %v602_v50 }
 0x2a3   :  { %v636_v54 = vmax.f32 %v603_v52, 0.0 }
 0x2a5   :  { %768 = vmatmul.bf16.gmra.mxu3 %v645_v55  ;;  %v2029_v56 = vpack.c.bf16 %v636_v54, %v635_v53  ;;  %v1704_v55 = vld [vmem:[#allocation2 + $0x108] sm:$0xff] }
 0x2a6   :  { %1134 = vmatpush.bf16.msrb.mxu1 %v1704_v55 }
 0x2a8   :  { %v729_v57 = vpop.f32.mrf.mxu3 }
 0x2a9   :  { %v730_v0 = vadd.f32 %v2035_v60, %v729_v57 }
 0x2aa   :  { %1135 = vmatpush.bf16.msrb.mxu1 %v1703_v2 }
 0x2ab   :  { %v809_v4 = vmax.f32 %v730_v0, 0.0  ;;  %v1717_v0 = vld [vmem:[#allocation2 + $0x170] sm:$0xff] }
 0x2ac   :  { %1333 = vmatpush.bf16.msrb.mxu2 %v1717_v0 }
 0x2b0   :  { %v731_v1 = vpop.f32.mrf.mxu3  ;;  %1334 = vmatpush.bf16.msrb.mxu2 %v1716_v12 }
 0x2b1   :  { %v732_v3 = vadd.f32 %v2035_v60, %v731_v1 }
 0x2b3   :  { %v810_v5 = vmax.f32 %v732_v3, 0.0 }
 0x2b4   :  { %1335 = vmatpush.bf16.msrb.mxu2 %v1715_v23 }
 0x2b5   :  { %v841_v8 = vpack.c.bf16 %v810_v5, %v809_v4  ;;  %773 = vmatmul.bf16.gmra.mxu3 %v646_v6 }
 0x2b7   :  { %932 = vmatmul.bf16.vlgmr.msrb.gmra.mxu0 %v841_v8 }
 0x2b8   :  { %v734_v9 = vpop.f32.mrf.mxu3  ;;  %1336 = vmatpush.bf16.msrb.mxu2 %v1714_v47 }
 0x2b9   :  { %v735_v15 = vadd.f32 %v2035_v60, %v734_v9 }
 0x2bb   :  { %v811_v18 = vmax.f32 %v735_v15, 0.0 }
 0x2c0   :  { %v736_v16 = vpop.f32.mrf.mxu3 }
 0x2c1   :  { %v737_v17 = vadd.f32 %v2035_v60, %v736_v16 }
 0x2c3   :  { %v812_v19 = vmax.f32 %v737_v17, 0.0 }
 0x2c5   :  { %778 = vmatmul.bf16.gmra.mxu3 %v647_v20  ;;  %v842_v22 = vpack.c.bf16 %v812_v19, %v811_v18 }
 0x2c7   :  { %937 = vmatmul.bf16.gmra.mxu0 %v842_v22  ;;  %v2067_v22 = vld [vmem:[%s2288_s3 + $0x4] ss:$0 sm:$0xff] }
 0x2c8   :  { %v739_v25 = vpop.f32.mrf.mxu3 }
 0x2c9   :  { %v740_v49 = vadd.f32 %v2035_v60, %v739_v25 }
 0x2cb   :  { %v813_v33 = vmax.f32 %v740_v49, 0.0 }
 0x2d0   :  { %v741_v30 = vpop.f32.mrf.mxu3 }
 0x2d1   :  { %v742_v32 = vadd.f32 %v2035_v60, %v741_v30 }
 0x2d3   :  { %v814_v34 = vmax.f32 %v742_v32, 0.0 }
 0x2d5   :  { %783 = vmatmul.bf16.gmra.mxu3 %v648_v35  ;;  %v843_v36 = vpack.c.bf16 %v814_v34, %v813_v33 }
 0x2d7   :  { %942 = vmatmul.bf16.gmra.mxu0 %v843_v36 }
 0x2d8   :  { %v744_v38 = vpop.f32.mrf.mxu3 }
 0x2d9   :  { %v745_v40 = vadd.f32 %v2035_v60, %v744_v38 }
 0x2db   :  { %v815_v43 = vmax.f32 %v745_v40, 0.0 }
 0x2e0   :  { %v746_v42 = vpop.f32.mrf.mxu3 }
 0x2e1   :  { %v747_v24 = vadd.f32 %v2035_v60, %v746_v42 }
 0x2e3   :  { %v816_v44 = vmax.f32 %v747_v24, 0.0 }
 0x2e5   :  { %788 = vmatmul.bf16.gmra.mxu3 %v2011_v11  ;;  %v844_v45 = vpack.c.bf16 %v816_v44, %v815_v43 }
 0x2e7   :  { %947 = vmatmul.bf16.gmra.mxu0 %v844_v45 }
 0x2e8   :  { %v749_v46 = vpop.f32.mrf.mxu3 }
 0x2e9   :  { %v750_v48 = vadd.f32 %v2035_v60, %v749_v46 }
 0x2eb   :  { %v817_v52 = vmax.f32 %v750_v48, 0.0 }
 0x2f0   :  { %v751_v50 = vpop.f32.mrf.mxu3 }
 0x2f1   :  { %v752_v51 = vadd.f32 %v2035_v60, %v751_v50 }
 0x2f3   :  { %v818_v53 = vmax.f32 %v752_v51, 0.0 }
 0x2f5   :  { %v845_v54 = vpack.c.bf16 %v818_v53, %v817_v52  ;;  %793 = vmatmul.bf16.gmra.mxu3 %v2017_v27 }
 0x2f7   :  { %952 = vmatmul.bf16.gmra.mxu0 %v845_v54 }
 0x2f8   :  { %v754_v57 = vpop.f32.mrf.mxu3 }
 0x2f9   :  { %v755_v11 = vadd.f32 %v2035_v60, %v754_v57 }
 0x2fb   :  { %v819_v61 = vmax.f32 %v755_v11, 0.0 }
 0x300   :  { %v756_v58 = vpop.f32.mrf.mxu3 }
 0x301   :  { %v757_v59 = vadd.f32 %v2035_v60, %v756_v58 }
 0x303   :  { %v820_v62 = vmax.f32 %v757_v59, 0.0 }
 0x305   :  { %v846_v63 = vpack.c.bf16 %v820_v62, %v819_v61  ;;  %798 = vmatmul.bf16.gmra.mxu3 %v2023_v41 }
 0x307   :  { %957 = vmatmul.bf16.gmra.mxu0 %v846_v63 }
 0x308   :  { %v759_v1 = vpop.f32.mrf.mxu3 }
 0x309   :  { %v760_v27 = vadd.f32 %v2035_v60, %v759_v1 }
 0x30b   :  { %v821_v5 = vmax.f32 %v760_v27, 0.0 }
 0x310   :  { %v761_v3 = vpop.f32.mrf.mxu3 }
 0x311   :  { %v762_v4 = vadd.f32 %v2035_v60, %v761_v3 }
 0x313   :  { %v822_v6 = vmax.f32 %v762_v4, 0.0 }
 0x315   :  { %v847_v7 = vpack.c.bf16 %v822_v6, %v821_v5  ;;  %803 = vmatmul.bf16.gmra.mxu3 %v2029_v56  ;;  %v1713_v6 = vld [vmem:[#allocation2 + $0x150] sm:$0xff] }
 0x316   :  { %1337 = vmatpush.bf16.msrb.mxu2 %v1713_v6 }
 0x317   :  { %962 = vmatmul.bf16.gmra.mxu0 %v847_v7 }
 0x318   :  { %v764_v8 = vpop.f32.mrf.mxu3 }
 0x319   :  { %v765_v41 = vadd.f32 %v2035_v60, %v764_v8 }
 0x31b   :  { %v823_v13 = vmax.f32 %v765_v41, 0.0 }
 0x320   :  { %v766_v9 = vpop.f32.mrf.mxu3 }
 0x321   :  { %v767_v10 = vadd.f32 %v2035_v60, %v766_v9 }
 0x323   :  { %v824_v14 = vmax.f32 %v767_v10, 0.0 }
 0x325   :  { %v848_v15 = vpack.c.bf16 %v824_v14, %v823_v13 }
 0x327   :  { %967 = vmatmul.bf16.gmra.mxu0 %v848_v15 }
 0x328   :  { %v769_v16 = vpop.f32.mrf.mxu3 }
 0x329   :  { %v770_v37 = vadd.f32 %v2035_v60, %v769_v16 }
 0x32b   :  { %v825_v56 = vmax.f32 %v770_v37, 0.0 }
 0x330   :  { %v771_v17 = vpop.f32.mrf.mxu3 }
 0x331   :  { %v772_v18 = vadd.f32 %v2035_v60, %v771_v17 }
 0x333   :  { %v826_v19 = vmax.f32 %v772_v18, 0.0 }
 0x334   :  { %v933_v20 = vpop.f32.mrf.mxu0 }
 0x335   :  { %v849_v21 = vpack.c.bf16 %v826_v19, %v825_v56  ;;  %v934_v26 = vadd.f32 %v2067_v22, %v933_v20 }
 0x337   :  { %972 = vmatmul.bf16.gmra.mxu0 %v849_v21  ;;  %v1013_v49 = vmax.f32 %v934_v26, 0.0 }
 0x338   :  { %v774_v25 = vpop.f32.mrf.mxu3 }
 0x339   :  { %v775_v30 = vadd.f32 %v2035_v60, %v774_v25 }
 0x33b   :  { %v827_v35 = vmax.f32 %v775_v30, 0.0 }
 0x33c   :  { %v935_v28 = vpop.f32.mrf.mxu0 }
 0x33d   :  { %v936_v29 = vadd.f32 %v2067_v22, %v935_v28 }
 0x33f   :  { %v1014_v31 = vmax.f32 %v936_v29, 0.0 }
 0x340   :  { %v776_v32 = vpop.f32.mrf.mxu3 }
 0x341   :  { %v1045_v33 = vpack.c.bf16 %v1014_v31, %v1013_v49  ;;  %v777_v34 = vadd.f32 %v2035_v60, %v776_v32  ;;  %v1712_v31 = vld [vmem:[#allocation2 + $0x148] sm:$0xff] }
 0x342   :  { %1338 = vmatpush.bf16.msrb.mxu2 %v1712_v31 }
 0x343   :  { %v828_v36 = vmax.f32 %v777_v34, 0.0  ;;  %1136 = vmatmul.bf16.vlgmr.msrb.gmra.mxu1 %v1045_v33 }
 0x344   :  { %v938_v38 = vpop.f32.mrf.mxu0 }
 0x345   :  { %v850_v39 = vpack.c.bf16 %v828_v36, %v827_v35  ;;  %v939_v42 = vadd.f32 %v2067_v22, %v938_v38 }
 0x347   :  { %977 = vmatmul.bf16.gmra.mxu0 %v850_v39  ;;  %v1015_v44 = vmax.f32 %v939_v42, 0.0 }
 0x348   :  { %v779_v40 = vpop.f32.mrf.mxu3 }
 0x349   :  { %v780_v45 = vadd.f32 %v2035_v60, %v779_v40 }
 0x34b   :  { %v829_v52 = vmax.f32 %v780_v45, 0.0 }
 0x34c   :  { %v940_v24 = vpop.f32.mrf.mxu0 }
 0x34d   :  { %v941_v43 = vadd.f32 %v2067_v22, %v940_v24 }
 0x34f   :  { %v1016_v46 = vmax.f32 %v941_v43, 0.0 }
 0x350   :  { %v781_v48 = vpop.f32.mrf.mxu3 }
 0x351   :  { %v782_v50 = vadd.f32 %v2035_v60, %v781_v48  ;;  %v1046_v51 = vpack.c.bf16 %v1016_v46, %v1015_v44 }
 0x353   :  { %v830_v53 = vmax.f32 %v782_v50, 0.0  ;;  %1141 = vmatmul.bf16.gmra.mxu1 %v1046_v51 }
 0x354   :  { %v943_v54 = vpop.f32.mrf.mxu0 }
 0x355   :  { %v851_v55 = vpack.c.bf16 %v830_v53, %v829_v52  ;;  %v944_v11 = vadd.f32 %v2067_v22, %v943_v54  ;;  %v1711_v52 = vld [vmem:[#allocation2 + $0x140] sm:$0xff] }
 0x356   :  { %1339 = vmatpush.bf16.msrb.mxu2 %v1711_v52 }
 0x357   :  { %982 = vmatmul.bf16.gmra.mxu0 %v851_v55  ;;  %v1017_v61 = vmax.f32 %v944_v11, 0.0 }
 0x358   :  { %v784_v57 = vpop.f32.mrf.mxu3 }
 0x359   :  { %v785_v62 = vadd.f32 %v2035_v60, %v784_v57 }
 0x35b   :  { %v831_v27 = vmax.f32 %v785_v62, 0.0 }
 0x35c   :  { %v945_v58 = vpop.f32.mrf.mxu0 }
 0x35d   :  { %v946_v59 = vadd.f32 %v2067_v22, %v945_v58 }
 0x35f   :  { %v1018_v63 = vmax.f32 %v946_v59, 0.0 }
 0x360   :  { %v786_v0 = vpop.f32.mrf.mxu3 }
 0x361   :  { %v787_v1 = vadd.f32 %v2035_v60, %v786_v0  ;;  %v1047_v2 = vpack.c.bf16 %v1018_v63, %v1017_v61 }
 0x363   :  { %v832_v3 = vmax.f32 %v787_v1, 0.0  ;;  %1146 = vmatmul.bf16.gmra.mxu1 %v1047_v2 }
 0x364   :  { %v948_v4 = vpop.f32.mrf.mxu0 }
 0x365   :  { %v852_v5 = vpack.c.bf16 %v832_v3, %v831_v27  ;;  %v949_v8 = vadd.f32 %v2067_v22, %v948_v4 }
 0x367   :  { %987 = vmatmul.bf16.gmra.mxu0 %v852_v5  ;;  %v1019_v10 = vmax.f32 %v949_v8, 0.0 }
 0x368   :  { %v789_v7 = vpop.f32.mrf.mxu3 }
 0x369   :  { %v790_v12 = vadd.f32 %v2035_v60, %v789_v7 }
 0x36b   :  { %v833_v37 = vmax.f32 %v790_v12, 0.0 }
 0x36c   :  { %v950_v41 = vpop.f32.mrf.mxu0 }
 0x36d   :  { %v951_v9 = vadd.f32 %v2067_v22, %v950_v41 }
 0x36f   :  { %v1020_v13 = vmax.f32 %v951_v9, 0.0 }
 0x370   :  { %v791_v14 = vpop.f32.mrf.mxu3 }
 0x371   :  { %v792_v15 = vadd.f32 %v2035_v60, %v791_v14  ;;  %v1048_v16 = vpack.c.bf16 %v1020_v13, %v1019_v10 }
 0x373   :  { %v834_v17 = vmax.f32 %v792_v15, 0.0  ;;  %1151 = vmatmul.bf16.gmra.mxu1 %v1048_v16  ;;  %v2104_v16 = vld [vmem:[%s2288_s3 + $0x5] ss:$0 sm:$0xff] }
 0x374   :  { %v953_v18 = vpop.f32.mrf.mxu0 }
 0x375   :  { %v853_v56 = vpack.c.bf16 %v834_v17, %v833_v37  ;;  %v954_v20 = vadd.f32 %v2067_v22, %v953_v18 }
 0x377   :  { %992 = vmatmul.bf16.gmra.mxu0 %v853_v56  ;;  %v1021_v25 = vmax.f32 %v954_v20, 0.0 }
 0x378   :  { %v794_v19 = vpop.f32.mrf.mxu3 }
 0x379   :  { %v795_v26 = vadd.f32 %v2035_v60, %v794_v19 }
 0x37b   :  { %v835_v32 = vmax.f32 %v795_v26, 0.0 }
 0x37c   :  { %v955_v21 = vpop.f32.mrf.mxu0 }
 0x37d   :  { %v956_v23 = vadd.f32 %v2067_v22, %v955_v21 }
 0x37f   :  { %v1022_v28 = vmax.f32 %v956_v23, 0.0 }
 0x380   :  { %v796_v29 = vpop.f32.mrf.mxu3 }
 0x381   :  { %v1049_v49 = vpack.c.bf16 %v1022_v28, %v1021_v25  ;;  %v797_v30 = vadd.f32 %v2035_v60, %v796_v29 }
 0x383   :  { %v836_v33 = vmax.f32 %v797_v30, 0.0  ;;  %1156 = vmatmul.bf16.gmra.mxu1 %v1049_v49 }
 0x384   :  { %v958_v34 = vpop.f32.mrf.mxu0 }
 0x385   :  { %v854_v35 = vpack.c.bf16 %v836_v33, %v835_v32  ;;  %v959_v38 = vadd.f32 %v2067_v22, %v958_v34 }
 0x387   :  { %997 = vmatmul.bf16.gmra.mxu0 %v854_v35  ;;  %v1023_v42 = vmax.f32 %v959_v38, 0.0 }
 0x388   :  { %v799_v36 = vpop.f32.mrf.mxu3 }
 0x389   :  { %v800_v24 = vadd.f32 %v2035_v60, %v799_v36 }
 0x38b   :  { %v837_v47 = vmax.f32 %v800_v24, 0.0 }
 0x38c   :  { %v960_v39 = vpop.f32.mrf.mxu0 }
 0x38d   :  { %v961_v40 = vadd.f32 %v2067_v22, %v960_v39 }
 0x38f   :  { %v1024_v43 = vmax.f32 %v961_v40, 0.0 }
 0x390   :  { %v801_v44 = vpop.f32.mrf.mxu3 }
 0x391   :  { %v1050_v45 = vpack.c.bf16 %v1024_v43, %v1023_v42  ;;  %v802_v46 = vadd.f32 %v2035_v60, %v801_v44 }
 0x393   :  { %v838_v48 = vmax.f32 %v802_v46, 0.0  ;;  %1161 = vmatmul.bf16.gmra.mxu1 %v1050_v45 }
 0x394   :  { %v963_v50 = vpop.f32.mrf.mxu0 }
 0x395   :  { %v855_v51 = vpack.c.bf16 %v838_v48, %v837_v47  ;;  %v964_v54 = vadd.f32 %v2067_v22, %v963_v50 }
 0x397   :  { %1002 = vmatmul.bf16.gmra.mxu0 %v855_v51  ;;  %v1025_v11 = vmax.f32 %v964_v54, 0.0 }
 0x398   :  { %v804_v53 = vpop.f32.mrf.mxu3 }
 0x399   :  { %v805_v58 = vadd.f32 %v2035_v60, %v804_v53 }
 0x39b   :  { %v839_v0 = vmax.f32 %v805_v58, 0.0 }
 0x39c   :  { %v965_v55 = vpop.f32.mrf.mxu0 }
 0x39d   :  { %v966_v57 = vadd.f32 %v2067_v22, %v965_v55 }
 0x39f   :  { %v1026_v59 = vmax.f32 %v966_v57, 0.0 }
 0x3a0   :  { %v806_v61 = vpop.f32.mrf.mxu3 }
 0x3a1   :  { %v1051_v62 = vpack.c.bf16 %v1026_v59, %v1025_v11  ;;  %v807_v63 = vadd.f32 %v2035_v60, %v806_v61 }
 0x3a3   :  { %v840_v1 = vmax.f32 %v807_v63, 0.0  ;;  %1166 = vmatmul.bf16.gmra.mxu1 %v1051_v62 }
 0x3a4   :  { %v968_v2 = vpop.f32.mrf.mxu0 }
 0x3a5   :  { %v856_v27 = vpack.c.bf16 %v840_v1, %v839_v0  ;;  %v969_v3 = vadd.f32 %v2067_v22, %v968_v2 }
 0x3a7   :  { %1007 = vmatmul.bf16.gmra.mxu0 %v856_v27  ;;  %v1027_v6 = vmax.f32 %v969_v3, 0.0 }
 0x3ac   :  { %v970_v4 = vpop.f32.mrf.mxu0 }
 0x3ad   :  { %v971_v5 = vadd.f32 %v2067_v22, %v970_v4 }
 0x3af   :  { %v1028_v7 = vmax.f32 %v971_v5, 0.0 }
 0x3b1   :  { %v1052_v8 = vpack.c.bf16 %v1028_v7, %v1027_v6 }
 0x3b3   :  { %1171 = vmatmul.bf16.gmra.mxu1 %v1052_v8 }
 0x3b4   :  { %v973_v41 = vpop.f32.mrf.mxu0 }
 0x3b5   :  { %v974_v9 = vadd.f32 %v2067_v22, %v973_v41 }
 0x3b7   :  { %v1029_v12 = vmax.f32 %v974_v9, 0.0 }
 0x3bc   :  { %v975_v10 = vpop.f32.mrf.mxu0 }
 0x3bd   :  { %v976_v60 = vadd.f32 %v2067_v22, %v975_v10 }
 0x3bf   :  { %v1030_v13 = vmax.f32 %v976_v60, 0.0 }
 0x3c0   :  { %v1137_v14 = vpop.f32.mrf.mxu1 }
 0x3c1   :  { %v1053_v15 = vpack.c.bf16 %v1030_v13, %v1029_v12  ;;  %v1138_v17 = vadd.f32 %v2104_v16, %v1137_v14 }
 0x3c3   :  { %1176 = vmatmul.bf16.gmra.mxu1 %v1053_v15  ;;  %v1217_v19 = vmax.f32 %v1138_v17, 0.0 }
 0x3c4   :  { %v978_v37 = vpop.f32.mrf.mxu0 }
 0x3c5   :  { %v979_v20 = vadd.f32 %v2067_v22, %v978_v37 }
 0x3c7   :  { %v1031_v28 = vmax.f32 %v979_v20, 0.0 }
 0x3c8   :  { %v1139_v18 = vpop.f32.mrf.mxu1 }
 0x3c9   :  { %v1140_v56 = vadd.f32 %v2104_v16, %v1139_v18 }
 0x3cb   :  { %v1218_v21 = vmax.f32 %v1140_v56, 0.0 }
 0x3cc   :  { %v980_v23 = vpop.f32.mrf.mxu0 }
 0x3cd   :  { %v1249_v25 = vpack.c.bf16 %v1218_v21, %v1217_v19  ;;  %v981_v26 = vadd.f32 %v2067_v22, %v980_v23 }
 0x3cf   :  { %v1032_v29 = vmax.f32 %v981_v26, 0.0  ;;  %1340 = vmatmul.bf16.vlgmr.msrb.gmra.mxu2 %v1249_v25 }
 0x3d0   :  { %v1142_v49 = vpop.f32.mrf.mxu1 }
 0x3d1   :  { %v1054_v30 = vpack.c.bf16 %v1032_v29, %v1031_v28  ;;  %v1143_v32 = vadd.f32 %v2104_v16, %v1142_v49 }
 0x3d3   :  { %1181 = vmatmul.bf16.gmra.mxu1 %v1054_v30  ;;  %v1219_v35 = vmax.f32 %v1143_v32, 0.0 }
 0x3d4   :  { %v983_v31 = vpop.f32.mrf.mxu0 }
 0x3d5   :  { %v984_v36 = vadd.f32 %v2067_v22, %v983_v31 }
 0x3d7   :  { %v1033_v24 = vmax.f32 %v984_v36, 0.0 }
 0x3d8   :  { %v1144_v33 = vpop.f32.mrf.mxu1 }
 0x3d9   :  { %v1145_v34 = vadd.f32 %v2104_v16, %v1144_v33 }
 0x3db   :  { %v1220_v38 = vmax.f32 %v1145_v34, 0.0 }
 0x3dc   :  { %v985_v39 = vpop.f32.mrf.mxu0 }
 0x3dd   :  { %v986_v40 = vadd.f32 %v2067_v22, %v985_v39  ;;  %v1250_v42 = vpack.c.bf16 %v1220_v38, %v1219_v35 }
 0x3df   :  { %v1034_v43 = vmax.f32 %v986_v40, 0.0  ;;  %1345 = vmatmul.bf16.gmra.mxu2 %v1250_v42 }
 0x3e0   :  { %v1147_v44 = vpop.f32.mrf.mxu1 }
 0x3e1   :  { %v1055_v45 = vpack.c.bf16 %v1034_v43, %v1033_v24  ;;  %v1148_v47 = vadd.f32 %v2104_v16, %v1147_v44 }
 0x3e3   :  { %1186 = vmatmul.bf16.gmra.mxu1 %v1055_v45  ;;  %v1221_v51 = vmax.f32 %v1148_v47, 0.0 }
 0x3e4   :  { %v988_v46 = vpop.f32.mrf.mxu0 }
 0x3e5   :  { %v989_v52 = vadd.f32 %v2067_v22, %v988_v46 }
 0x3e7   :  { %v1035_v11 = vmax.f32 %v989_v52, 0.0 }
 0x3e8   :  { %v1149_v48 = vpop.f32.mrf.mxu1 }
 0x3e9   :  { %v1150_v50 = vadd.f32 %v2104_v16, %v1149_v48 }
 0x3eb   :  { %v1222_v53 = vmax.f32 %v1150_v50, 0.0 }
 0x3ec   :  { %v990_v54 = vpop.f32.mrf.mxu0 }
 0x3ed   :  { %v991_v55 = vadd.f32 %v2067_v22, %v990_v54  ;;  %v1251_v57 = vpack.c.bf16 %v1222_v53, %v1221_v51 }
 0x3ef   :  { %v1036_v58 = vmax.f32 %v991_v55, 0.0  ;;  %1350 = vmatmul.bf16.gmra.mxu2 %v1251_v57 }
 0x3f0   :  { %v1152_v59 = vpop.f32.mrf.mxu1 }
 0x3f1   :  { %v1056_v61 = vpack.c.bf16 %v1036_v58, %v1035_v11  ;;  %v1153_v63 = vadd.f32 %v2104_v16, %v1152_v59 }
 0x3f3   :  { %1191 = vmatmul.bf16.gmra.mxu1 %v1056_v61  ;;  %v1223_v2 = vmax.f32 %v1153_v63, 0.0 }
 0x3f4   :  { %v993_v62 = vpop.f32.mrf.mxu0 }
 0x3f5   :  { %v994_v27 = vadd.f32 %v2067_v22, %v993_v62 }
 0x3f7   :  { %v1037_v7 = vmax.f32 %v994_v27, 0.0 }
 0x3f8   :  { %v1154_v0 = vpop.f32.mrf.mxu1 }
 0x3f9   :  { %v1155_v1 = vadd.f32 %v2104_v16, %v1154_v0 }
 0x3fb   :  { %v1224_v3 = vmax.f32 %v1155_v1, 0.0 }
 0x3fc   :  { %v995_v4 = vpop.f32.mrf.mxu0 }
 0x3fd   :  { %v996_v5 = vadd.f32 %v2067_v22, %v995_v4  ;;  %v1252_v6 = vpack.c.bf16 %v1224_v3, %v1223_v2  ;;  %v2141_v3 = vld [vmem:[%s2288_s3 + $0x6] ss:$0 sm:$0xff] }
 0x3ff   :  { %v1038_v8 = vmax.f32 %v996_v5, 0.0  ;;  %1355 = vmatmul.bf16.gmra.mxu2 %v1252_v6 }
 0x400   :  { %v1157_v41 = vpop.f32.mrf.mxu1 }
 0x401   :  { %v1057_v9 = vpack.c.bf16 %v1038_v8, %v1037_v7  ;;  %v1158_v60 = vadd.f32 %v2104_v16, %v1157_v41 }
 0x403   :  { %1196 = vmatmul.bf16.gmra.mxu1 %v1057_v9  ;;  %v1225_v14 = vmax.f32 %v1158_v60, 0.0 }
 0x404   :  { %v998_v10 = vpop.f32.mrf.mxu0 }
 0x405   :  { %v999_v15 = vadd.f32 %v2067_v22, %v998_v10 }
 0x407   :  { %v1039_v19 = vmax.f32 %v999_v15, 0.0 }
 0x408   :  { %v1159_v12 = vpop.f32.mrf.mxu1 }
 0x409   :  { %v1160_v13 = vadd.f32 %v2104_v16, %v1159_v12 }
 0x40b   :  { %v1226_v37 = vmax.f32 %v1160_v13, 0.0 }
 0x40c   :  { %v1000_v17 = vpop.f32.mrf.mxu0 }
 0x40d   :  { %v1253_v18 = vpack.c.bf16 %v1226_v37, %v1225_v14  ;;  %v1001_v56 = vadd.f32 %v2067_v22, %v1000_v17 }
 0x40f   :  { %v1040_v20 = vmax.f32 %v1001_v56, 0.0  ;;  %1360 = vmatmul.bf16.gmra.mxu2 %v1253_v18 }
 0x410   :  { %v1162_v21 = vpop.f32.mrf.mxu1 }
 0x411   :  { %v1058_v23 = vpack.c.bf16 %v1040_v20, %v1039_v19  ;;  %v1163_v26 = vadd.f32 %v2104_v16, %v1162_v21 }
 0x413   :  { %1201 = vmatmul.bf16.gmra.mxu1 %v1058_v23  ;;  %v1227_v49 = vmax.f32 %v1163_v26, 0.0 }
 0x414   :  { %v1003_v25 = vpop.f32.mrf.mxu0 }
 0x415   :  { %v1004_v30 = vadd.f32 %v2067_v22, %v1003_v25 }
 0x417   :  { %v1041_v35 = vmax.f32 %v1004_v30, 0.0 }
 0x418   :  { %v1164_v28 = vpop.f32.mrf.mxu1 }
 0x419   :  { %v1165_v29 = vadd.f32 %v2104_v16, %v1164_v28 }
 0x41b   :  { %v1228_v31 = vmax.f32 %v1165_v29, 0.0 }
 0x41c   :  { %v1005_v32 = vpop.f32.mrf.mxu0 }
 0x41d   :  { %v1254_v33 = vpack.c.bf16 %v1228_v31, %v1227_v49  ;;  %v1006_v34 = vadd.f32 %v2067_v22, %v1005_v32 }
 0x41f   :  { %v1042_v36 = vmax.f32 %v1006_v34, 0.0  ;;  %1365 = vmatmul.bf16.gmra.mxu2 %v1254_v33 }
 0x420   :  { %v1167_v38 = vpop.f32.mrf.mxu1 }
 0x421   :  { %v1059_v39 = vpack.c.bf16 %v1042_v36, %v1041_v35  ;;  %v1168_v42 = vadd.f32 %v2104_v16, %v1167_v38 }
 0x423   :  { %1206 = vmatmul.bf16.gmra.mxu1 %v1059_v39  ;;  %v1229_v44 = vmax.f32 %v1168_v42, 0.0 }
 0x424   :  { %v1008_v40 = vpop.f32.mrf.mxu0 }
 0x425   :  { %v1009_v45 = vadd.f32 %v2067_v22, %v1008_v40 }
 0x427   :  { %v1043_v51 = vmax.f32 %v1009_v45, 0.0 }
 0x428   :  { %v1169_v24 = vpop.f32.mrf.mxu1 }
 0x429   :  { %v1170_v43 = vadd.f32 %v2104_v16, %v1169_v24 }
 0x42b   :  { %v1230_v46 = vmax.f32 %v1170_v43, 0.0 }
 0x42c   :  { %v1010_v47 = vpop.f32.mrf.mxu0 }
 0x42d   :  { %v1255_v48 = vpack.c.bf16 %v1230_v46, %v1229_v44  ;;  %v1011_v50 = vadd.f32 %v2067_v22, %v1010_v47 }
 0x42f   :  { %v1044_v52 = vmax.f32 %v1011_v50, 0.0  ;;  %1370 = vmatmul.bf16.gmra.mxu2 %v1255_v48 }
 0x430   :  { %v1172_v53 = vpop.f32.mrf.mxu1 }
 0x431   :  { %v1060_v54 = vpack.c.bf16 %v1044_v52, %v1043_v51  ;;  %v1173_v55 = vadd.f32 %v2104_v16, %v1172_v53 }
 0x433   :  { %1211 = vmatmul.bf16.gmra.mxu1 %v1060_v54  ;;  %v1231_v58 = vmax.f32 %v1173_v55, 0.0 }
 0x438   :  { %v1174_v57 = vpop.f32.mrf.mxu1 }
 0x439   :  { %v1175_v11 = vadd.f32 %v2104_v16, %v1174_v57 }
 0x43b   :  { %v1232_v59 = vmax.f32 %v1175_v11, 0.0 }
 0x43d   :  { %v1256_v61 = vpack.c.bf16 %v1232_v59, %v1231_v58 }
 0x43f   :  { %1375 = vmatmul.bf16.gmra.mxu2 %v1256_v61 }
 0x440   :  { %v1177_v62 = vpop.f32.mrf.mxu1 }
 0x441   :  { %v1178_v63 = vadd.f32 %v2104_v16, %v1177_v62 }
 0x443   :  { %v1233_v1 = vmax.f32 %v1178_v63, 0.0 }
 0x448   :  { %v1179_v0 = vpop.f32.mrf.mxu1 }
 0x449   :  { %v1180_v22 = vadd.f32 %v2104_v16, %v1179_v0 }
 0x44b   :  { %v1234_v2 = vmax.f32 %v1180_v22, 0.0 }
 0x44d   :  { %v1257_v27 = vpack.c.bf16 %v1234_v2, %v1233_v1 }
 0x44f   :  { %1380 = vmatmul.bf16.gmra.mxu2 %v1257_v27 }
 0x450   :  { %v1182_v4 = vpop.f32.mrf.mxu1 }
 0x451   :  { %v1183_v7 = vadd.f32 %v2104_v16, %v1182_v4 }
 0x452   :  { %v1341_v5 = vpop.f32.mrf.mxu2 }
 0x453   :  { %v1342_v6 = vadd.f32 %v2141_v3, %v1341_v5  ;;  %v1235_v10 = vmax.f32 %v1183_v7, 0.0 }
 0x455   :  { %1421 = vst [vmem:[%s2289_s4] sm:$0xff] %v1342_v6 }
 0x458   :  { %v1184_v8 = vpop.f32.mrf.mxu1 }
 0x459   :  { %v1185_v41 = vadd.f32 %v2104_v16, %v1184_v8 }
 0x45a   :  { %v1343_v9 = vpop.f32.mrf.mxu2 }
 0x45b   :  { %v1236_v60 = vmax.f32 %v1185_v41, 0.0  ;;  %v1344_v12 = vadd.f32 %v2141_v3, %v1343_v9 }
 0x45d   :  { %v1258_v13 = vpack.c.bf16 %v1236_v60, %v1235_v10  ;;  %1422 = vst [vmem:[%s2289_s4 + $0x8] sm:$0xff] %v1344_v12 }
 0x45f   :  { %1385 = vmatmul.bf16.gmra.mxu2 %v1258_v13 }
 0x460   :  { %v1187_v14 = vpop.f32.mrf.mxu1 }
 0x461   :  { %v1188_v17 = vadd.f32 %v2104_v16, %v1187_v14 }
 0x462   :  { %v1346_v15 = vpop.f32.mrf.mxu2 }
 0x463   :  { %v1347_v37 = vadd.f32 %v2141_v3, %v1346_v15  ;;  %v1237_v20 = vmax.f32 %v1188_v17, 0.0 }
 0x465   :  { %1423 = vst [vmem:[%s2289_s4 + $0x10] sm:$0xff] %v1347_v37 }
 0x468   :  { %v1189_v18 = vpop.f32.mrf.mxu1 }
 0x469   :  { %v1190_v56 = vadd.f32 %v2104_v16, %v1189_v18 }
 0x46a   :  { %v1348_v19 = vpop.f32.mrf.mxu2 }
 0x46b   :  { %v1238_v21 = vmax.f32 %v1190_v56, 0.0  ;;  %v1349_v23 = vadd.f32 %v2141_v3, %v1348_v19 }
 0x46d   :  { %v1259_v25 = vpack.c.bf16 %v1238_v21, %v1237_v20  ;;  %1424 = vst [vmem:[%s2289_s4 + $0x18] sm:$0xff] %v1349_v23 }
 0x46f   :  { %1390 = vmatmul.bf16.gmra.mxu2 %v1259_v25 }
 0x470   :  { %v1192_v26 = vpop.f32.mrf.mxu1 }
 0x471   :  { %v1193_v49 = vadd.f32 %v2104_v16, %v1192_v26 }
 0x472   :  { %v1351_v28 = vpop.f32.mrf.mxu2 }
 0x473   :  { %v1352_v29 = vadd.f32 %v2141_v3, %v1351_v28  ;;  %v1239_v33 = vmax.f32 %v1193_v49, 0.0 }
 0x475   :  { %1425 = vst [vmem:[%s2289_s4 + $0x20] sm:$0xff] %v1352_v29 }
 0x478   :  { %v1194_v30 = vpop.f32.mrf.mxu1 }
 0x479   :  { %v1195_v31 = vadd.f32 %v2104_v16, %v1194_v30 }
 0x47a   :  { %v1353_v32 = vpop.f32.mrf.mxu2 }
 0x47b   :  { %v1240_v34 = vmax.f32 %v1195_v31, 0.0  ;;  %v1354_v35 = vadd.f32 %v2141_v3, %v1353_v32 }
 0x47d   :  { %v1260_v36 = vpack.c.bf16 %v1240_v34, %v1239_v33  ;;  %1426 = vst [vmem:[%s2289_s4 + $0x28] sm:$0xff] %v1354_v35 }
 0x47f   :  { %1395 = vmatmul.bf16.gmra.mxu2 %v1260_v36 }
 0x480   :  { %v1197_v38 = vpop.f32.mrf.mxu1 }
 0x481   :  { %v1198_v42 = vadd.f32 %v2104_v16, %v1197_v38 }
 0x482   :  { %v1356_v39 = vpop.f32.mrf.mxu2 }
 0x483   :  { %v1357_v40 = vadd.f32 %v2141_v3, %v1356_v39  ;;  %v1241_v45 = vmax.f32 %v1198_v42, 0.0 }
 0x485   :  { %1427 = vst [vmem:[%s2289_s4 + $0x30] sm:$0xff] %v1357_v40 }
 0x488   :  { %v1199_v24 = vpop.f32.mrf.mxu1 }
 0x489   :  { %v1200_v43 = vadd.f32 %v2104_v16, %v1199_v24 }
 0x48a   :  { %v1358_v44 = vpop.f32.mrf.mxu2 }
 0x48b   :  { %v1242_v46 = vmax.f32 %v1200_v43, 0.0  ;;  %v1359_v47 = vadd.f32 %v2141_v3, %v1358_v44 }
 0x48d   :  { %v1261_v48 = vpack.c.bf16 %v1242_v46, %v1241_v45  ;;  %1428 = vst [vmem:[%s2289_s4 + $0x38] sm:$0xff] %v1359_v47 }
 0x48f   :  { %1400 = vmatmul.bf16.gmra.mxu2 %v1261_v48 }
 0x490   :  { %v1202_v50 = vpop.f32.mrf.mxu1 }
 0x491   :  { %v1203_v53 = vadd.f32 %v2104_v16, %v1202_v50 }
 0x492   :  { %v1361_v51 = vpop.f32.mrf.mxu2 }
 0x493   :  { %v1362_v52 = vadd.f32 %v2141_v3, %v1361_v51  ;;  %v1243_v11 = vmax.f32 %v1203_v53, 0.0 }
 0x495   :  { %1429 = vst [vmem:[%s2289_s4 + $0x40] sm:$0xff] %v1362_v52 }
 0x498   :  { %v1204_v54 = vpop.f32.mrf.mxu1 }
 0x499   :  { %v1205_v55 = vadd.f32 %v2104_v16, %v1204_v54 }
 0x49a   :  { %v1363_v57 = vpop.f32.mrf.mxu2 }
 0x49b   :  { %v1244_v58 = vmax.f32 %v1205_v55, 0.0  ;;  %v1364_v59 = vadd.f32 %v2141_v3, %v1363_v57 }
 0x49d   :  { %v1262_v61 = vpack.c.bf16 %v1244_v58, %v1243_v11  ;;  %1430 = vst [vmem:[%s2289_s4 + $0x48] sm:$0xff] %v1364_v59 }
 0x49f   :  { %1405 = vmatmul.bf16.gmra.mxu2 %v1262_v61 }
 0x4a0   :  { %v1207_v62 = vpop.f32.mrf.mxu1 }
 0x4a1   :  { %v1208_v22 = vadd.f32 %v2104_v16, %v1207_v62 }
 0x4a2   :  { %v1366_v63 = vpop.f32.mrf.mxu2 }
 0x4a3   :  { %v1367_v0 = vadd.f32 %v2141_v3, %v1366_v63  ;;  %v1245_v4 = vmax.f32 %v1208_v22, 0.0 }
 0x4a5   :  { %1431 = vst [vmem:[%s2289_s4 + $0x50] sm:$0xff] %v1367_v0 }
 0x4a8   :  { %v1209_v1 = vpop.f32.mrf.mxu1 }
 0x4a9   :  { %v1210_v2 = vadd.f32 %v2104_v16, %v1209_v1 }
 0x4aa   :  { %v1368_v27 = vpop.f32.mrf.mxu2 }
 0x4ab   :  { %v1246_v5 = vmax.f32 %v1210_v2, 0.0  ;;  %v1369_v6 = vadd.f32 %v2141_v3, %v1368_v27 }
 0x4ad   :  { %v1263_v7 = vpack.c.bf16 %v1246_v5, %v1245_v4  ;;  %1432 = vst [vmem:[%s2289_s4 + $0x58] sm:$0xff] %v1369_v6 }
 0x4af   :  { %1410 = vmatmul.bf16.gmra.mxu2 %v1263_v7 }
 0x4b0   :  { %v1212_v8 = vpop.f32.mrf.mxu1 }
 0x4b1   :  { %v1213_v10 = vadd.f32 %v2104_v16, %v1212_v8 }
 0x4b2   :  { %v1371_v41 = vpop.f32.mrf.mxu2 }
 0x4b3   :  { %v1372_v9 = vadd.f32 %v2141_v3, %v1371_v41  ;;  %v1247_v14 = vmax.f32 %v1213_v10, 0.0 }
 0x4b5   :  { %1433 = vst [vmem:[%s2289_s4 + $0x60] sm:$0xff] %v1372_v9 }
 0x4b8   :  { %v1214_v60 = vpop.f32.mrf.mxu1 }
 0x4b9   :  { %v1215_v12 = vadd.f32 %v2104_v16, %v1214_v60 }
 0x4ba   :  { %v1373_v13 = vpop.f32.mrf.mxu2 }
 0x4bb   :  { %v1248_v15 = vmax.f32 %v1215_v12, 0.0  ;;  %v1374_v37 = vadd.f32 %v2141_v3, %v1373_v13 }
 0x4bd   :  { %v1264_v17 = vpack.c.bf16 %v1248_v15, %v1247_v14  ;;  %1434 = vst [vmem:[%s2289_s4 + $0x68] sm:$0xff] %v1374_v37 }
 0x4bf   :  { %1415 = vmatmul.bf16.gmra.mxu2 %v1264_v17 }
 0x4c2   :  { %v1376_v18 = vpop.f32.mrf.mxu2 }
 0x4c3   :  { %v1377_v56 = vadd.f32 %v2141_v3, %v1376_v18 }
 0x4c5   :  { %1435 = vst [vmem:[%s2289_s4 + $0x70] sm:$0xff] %v1377_v56 }
 0x4ca   :  { %v1378_v19 = vpop.f32.mrf.mxu2 }
 0x4cb   :  { %v1379_v16 = vadd.f32 %v2141_v3, %v1378_v19 }
 0x4cd   :  { %1436 = vst [vmem:[%s2289_s4 + $0x78] sm:$0xff] %v1379_v16 }
 0x4d2   :  { %v1381_v20 = vpop.f32.mrf.mxu2 }
 0x4d3   :  { %v1382_v21 = vadd.f32 %v2141_v3, %v1381_v20 }
 0x4d5   :  { %1437 = vst [vmem:[%s2289_s4 + $0x80] sm:$0xff] %v1382_v21 }
 0x4da   :  { %v1383_v23 = vpop.f32.mrf.mxu2 }
 0x4db   :  { %v1384_v25 = vadd.f32 %v2141_v3, %v1383_v23 }
 0x4dd   :  { %1438 = vst [vmem:[%s2289_s4 + $0x88] sm:$0xff] %v1384_v25 }
 0x4e2   :  { %v1386_v26 = vpop.f32.mrf.mxu2 }
 0x4e3   :  { %v1387_v28 = vadd.f32 %v2141_v3, %v1386_v26 }
 0x4e5   :  { %1439 = vst [vmem:[%s2289_s4 + $0x90] sm:$0xff] %v1387_v28 }
 0x4ea   :  { %v1388_v29 = vpop.f32.mrf.mxu2 }
 0x4eb   :  { %v1389_v49 = vadd.f32 %v2141_v3, %v1388_v29 }
 0x4ed   :  { %1440 = vst [vmem:[%s2289_s4 + $0x98] sm:$0xff] %v1389_v49 }
 0x4f2   :  { %v1391_v30 = vpop.f32.mrf.mxu2 }
 0x4f3   :  { %v1392_v31 = vadd.f32 %v2141_v3, %v1391_v30 }
 0x4f5   :  { %1441 = vst [vmem:[%s2289_s4 + $0xa0] sm:$0xff] %v1392_v31 }
 0x4fa   :  { %v1393_v32 = vpop.f32.mrf.mxu2 }
 0x4fb   :  { %v1394_v33 = vadd.f32 %v2141_v3, %v1393_v32 }
 0x4fd   :  { %1442 = vst [vmem:[%s2289_s4 + $0xa8] sm:$0xff] %v1394_v33 }
 0x502   :  { %v1396_v34 = vpop.f32.mrf.mxu2 }
 0x503   :  { %v1397_v35 = vadd.f32 %v2141_v3, %v1396_v34 }
 0x505   :  { %1443 = vst [vmem:[%s2289_s4 + $0xb0] sm:$0xff] %v1397_v35 }
 0x50a   :  { %v1398_v36 = vpop.f32.mrf.mxu2 }
 0x50b   :  { %v1399_v38 = vadd.f32 %v2141_v3, %v1398_v36 }
 0x50d   :  { %1444 = vst [vmem:[%s2289_s4 + $0xb8] sm:$0xff] %v1399_v38 }
 0x512   :  { %v1401_v39 = vpop.f32.mrf.mxu2 }
 0x513   :  { %v1402_v40 = vadd.f32 %v2141_v3, %v1401_v39 }
 0x515   :  { %1445 = vst [vmem:[%s2289_s4 + $0xc0] sm:$0xff] %v1402_v40 }
 0x51a   :  { %v1403_v42 = vpop.f32.mrf.mxu2 }
 0x51b   :  { %v1404_v24 = vadd.f32 %v2141_v3, %v1403_v42 }
 0x51d   :  { %1446 = vst [vmem:[%s2289_s4 + $0xc8] sm:$0xff] %v1404_v24 }
 0x522   :  { %v1406_v43 = vpop.f32.mrf.mxu2 }
 0x523   :  { %v1407_v44 = vadd.f32 %v2141_v3, %v1406_v43 }
 0x525   :  { %1447 = vst [vmem:[%s2289_s4 + $0xd0] sm:$0xff] %v1407_v44 }
 0x52a   :  { %v1408_v45 = vpop.f32.mrf.mxu2 }
 0x52b   :  { %v1409_v46 = vadd.f32 %v2141_v3, %v1408_v45 }
 0x52d   :  { %1448 = vst [vmem:[%s2289_s4 + $0xd8] sm:$0xff] %v1409_v46 }
 0x532   :  { %v1411_v47 = vpop.f32.mrf.mxu2 }
 0x533   :  { %v1412_v48 = vadd.f32 %v2141_v3, %v1411_v47 }
 0x535   :  { %1449 = vst [vmem:[%s2289_s4 + $0xe0] sm:$0xff] %v1412_v48 }
 0x53a   :  { %v1413_v50 = vpop.f32.mrf.mxu2 }
 0x53b   :  { %v1414_v51 = vadd.f32 %v2141_v3, %v1413_v50 }
 0x53d   :  { %1450 = vst [vmem:[%s2289_s4 + $0xe8] sm:$0xff] %v1414_v51 }
 0x542   :  { %v1416_v52 = vpop.f32.mrf.mxu2 }
 0x543   :  { %v1417_v53 = vadd.f32 %v2141_v3, %v1416_v52 }
 0x545   :  { %1451 = vst [vmem:[%s2289_s4 + $0xf0] sm:$0xff] %v1417_v53 }
 0x54a   :  { %v1418_v54 = vpop.f32.mrf.mxu2 }
 0x54b   :  { %v1419_v55 = vadd.f32 %v2141_v3, %v1418_v54 }
 0x54d   :  { %1452 = vst [vmem:[%s2289_s4 + $0xf8] sm:$0xff] %v1419_v55 }
 0x54e   :  { %1457 = vsyncpa [#allocation3], 1 }

</bundles_post_ra>
